<compile_context>
chip_gen: v7x
topology: tpu7x:2x2x1
jax: 0.10.0
libtpu: 0.0.40
codegen_flags: <defaults>
</compile_context>

<pallas_src>
import functools

import jax
import jax.numpy as jnp
from jax import lax
from jax.experimental import pallas as pl
from jax.experimental.pallas import tpu as pltpu


# ----------------------------------------------------------------------------
# In-kernel helpers (pure value math; loops are static Python unrolls)
# ----------------------------------------------------------------------------
def _lstm_cell(gates, c_prev, H):
    """PyTorch gate order (i, f, g, o).  gates: (B, 4H) value."""
    i = jax.nn.sigmoid(gates[:, 0:H])
    f = jax.nn.sigmoid(gates[:, H:2 * H])
    g = jnp.tanh(gates[:, 2 * H:3 * H])
    o = jax.nn.sigmoid(gates[:, 3 * H:4 * H])
    c = f * c_prev + i * g
    h = o * jnp.tanh(c)
    return h, c


def _bidir_layer(pf_steps, pb_steps, whh_blk, *, T, B, H):
    """Fused fwd+bwd recurrence: one unrolled T-step loop carrying both
    directions.  Per step, ONE block-diagonal matmul
        [h_f | h_b] (B,2H) @ block_diag(Whh_f^T, Whh_b^T) (2H,8H)
    produces both directions' recurrent gate contributions.

    pf_steps / pb_steps: length-T lists of (B, 4H) hoisted input projections
    (bias folded in), time-major.  Returns time-ordered hidden lists.
    """
    G = 4 * H
    zeros = jnp.zeros((B, H), jnp.float32)
    h_f, c_f, h_b, c_b = zeros, zeros, zeros, zeros
    hf_steps = [None] * T
    hb_steps = [None] * T
    for s in range(T):                       # static unroll (T is small)
        tf, tb = s, T - 1 - s
        h_cat = jnp.concatenate([h_f, h_b], axis=-1)                       # (B, 2H)
        gg = jnp.dot(h_cat, whh_blk, preferred_element_type=jnp.float32)   # (B, 8H)
        h_f, c_f = _lstm_cell(pf_steps[tf] + gg[:, 0:G], c_f, H)
        h_b, c_b = _lstm_cell(pb_steps[tb] + gg[:, G:2 * G], c_b, H)
        hf_steps[tf] = h_f
        hb_steps[tb] = h_b
    return hf_steps, hb_steps


def glove_fused_kernel(*refs, T, B, H, num_layers):
    """All bidirectional LSTM layers + FC head fused into one kernel.

    refs layout (no scratch; everything fits in vregs/VMEM):
      [0]                x2d       (T*B, D)   time-major flattened input
      [1+3l .. 3+3l]     layer l:  wih_all (D_in, 8H) = [Wih_f^T | Wih_b^T]
                                   bias_all (1, 8H)   = [b_f | b_b] (ih+hh)
                                   whh: non-final -> (2H, 8H) block-diag
                                        final     -> (H, 4H)  fwd-only
      [-3], [-2]         fc_wT (2H, C), fc_b (1, C)
      [-1]               out (B, C)
    """
    G = 4 * H
    x_ref = refs[0]
    layer_refs = [refs[1 + 3 * l:4 + 3 * l] for l in range(num_layers)]
    fcw_ref, fcb_ref, out_ref = refs[-3], refs[-2], refs[-1]

    hf_steps = hb_steps = None
    for l in range(num_layers):
        wih_ref, bias_ref, whh_ref = layer_refs[l]
        w = wih_ref[...]

        # Hoisted input projection (off the serial recurrence chain).
        if l == 0:
            # One big MXU matmul covering both directions for all timesteps.
            proj = jnp.dot(x_ref[...], w,
                           preferred_element_type=jnp.float32) + bias_ref[...]
            p_steps = [proj[t * B:(t + 1) * B, :] for t in range(T)]
        else:
            # Consume the previous layer's per-step hiddens directly as values
            # (no concat / reshape / scratch round-trip).
            w_top = w[0:H, :]
            w_bot = w[H:2 * H, :]
            bias = jnp.broadcast_to(bias_ref[...], (B, 2 * G))   # hoisted once
            p_steps = [
                jnp.dot(hf_steps[t], w_top, preferred_element_type=jnp.float32)
                + jnp.dot(hb_steps[t], w_bot, preferred_element_type=jnp.float32)
                + bias
                for t in range(T)
            ]
        # Per-direction split at 4H lanes (free lane-tile split when 4H=128).
        pf_steps = [p[:, 0:G] for p in p_steps]
        pb_steps = [p[:, G:2 * G] for p in p_steps]

        if l < num_layers - 1:
            hf_steps, hb_steps = _bidir_layer(pf_steps, pb_steps, whh_ref[...],
                                              T=T, B=B, H=H)
        else:
            # Final layer: only t = T-1 feeds the FC, so the forward direction
            # is carry-only (no per-step stores) and the backward direction is
            # a single cell step from the zero state (no W_hh term needed).
            zeros = jnp.zeros((B, H), jnp.float32)
            h, c = zeros, zeros
            whh_f = whh_ref[...]
            for t in range(T):               # static unroll
                gates = pf_steps[t] + jnp.dot(
                    h, whh_f, preferred_element_type=jnp.float32)
                h, c = _lstm_cell(gates, c, H)
            h_b, _ = _lstm_cell(pb_steps[T - 1], zeros, H)
            last = jnp.concatenate([h, h_b], axis=-1)            # (B, 2H)
            out_ref[...] = jnp.dot(last, fcw_ref[...],
                                   preferred_element_type=jnp.float32) + fcb_ref[...]


# ----------------------------------------------------------------------------
# Wrapper: one pallas_call for the whole forward pass
# ----------------------------------------------------------------------------
@jax.jit
def glove_forward(x, packed):
    """x: (B, T, dim) batch_first.  Mirrors Glove_model.forward."""
    x = x[:, :-1, :]                                        # drop last time step
    B, T, D = x.shape
    x2d = jnp.transpose(x, (1, 0, 2)).reshape(T * B, D)     # time-major, flat

    layers = packed["lstm"]
    num_layers = len(layers)
    H = layers[-1]["whh"].shape[0]          # final layer whh is (H, 4H)
    C = packed["fc_wT"].shape[1]

    args = [x2d]
    for layer in layers:
        args += [layer["wih_all"], layer["bias_all"], layer["whh"]]
    args += [packed["fc_wT"], packed["fc_b"]]

    vmem = pl.BlockSpec(memory_space=pltpu.MemorySpace.VMEM)
    return pl.pallas_call(
        functools.partial(glove_fused_kernel, T=T, B=B, H=H,
                          num_layers=num_layers),
        out_shape=jax.ShapeDtypeStruct((B, C), jnp.float32),
        in_specs=[vmem] * len(args),
        out_specs=vmem,
    )(*args)


def pack_params(params):
    """One-time layout conversion: transposes, bias fusion, block-diag W_hh."""
    layers = []
    n = len(params["lstm"])
    for idx, layer in enumerate(params["lstm"]):
        wih_f, whh_f, bih_f, bhh_f = layer["fwd"]
        wih_b, whh_b, bih_b, bhh_b = layer["bwd"]
        H = whh_f.shape[1]
        entry = {
            "wih_all": jnp.concatenate([wih_f.T, wih_b.T], axis=1),            # (D_in, 8H)
            "bias_all": jnp.concatenate([bih_f + bhh_f, bih_b + bhh_b])[None, :],  # (1, 8H)
        }
        if idx < n - 1:
            blk = jnp.zeros((2 * H, 8 * H), jnp.float32)
            blk = blk.at[0:H, 0:4 * H].set(whh_f.T)
            blk = blk.at[H:2 * H, 4 * H:8 * H].set(whh_b.T)
            entry["whh"] = blk                                                  # (2H, 8H)
        else:
            entry["whh"] = whh_f.T                                              # (H, 4H)
        layers.append(entry)
    return {
        "lstm": layers,
        "fc_wT": params["fc_w"].T,              # (2H, classes)
        "fc_b": params["fc_b"][None, :],        # (1, classes)
    }


# ----------------------------------------------------------------------------
# Deterministic parameter init (PyTorch-style U(-1/sqrt(H), 1/sqrt(H)))
# ----------------------------------------------------------------------------
def init_params(key, dim, classes, lstm_units, num_layers):
    H = lstm_units
    k = 1.0 / jnp.sqrt(H)
    layers = []
    for l in range(num_layers):
        d_in = dim if l == 0 else 2 * H
        layer = {}
        for name in ("fwd", "bwd"):
            key, k1, k2, k3, k4 = jax.random.split(key, 5)
            layer[name] = (
                jax.random.uniform(k1, (4 * H, d_in), jnp.float32, -k, k),  # w_ih
                jax.random.uniform(k2, (4 * H, H), jnp.float32, -k, k),     # w_hh
                jax.random.uniform(k3, (4 * H,), jnp.float32, -k, k),       # b_ih
                jax.random.uniform(k4, (4 * H,), jnp.float32, -k, k),       # b_hh
            )
        layers.append(layer)
    key, k1, k2 = jax.random.split(key, 3)
    kf = 1.0 / jnp.sqrt(2 * H)
    return {
        "lstm": layers,
        "fc_w": jax.random.uniform(k1, (classes, 2 * H), jnp.float32, -kf, kf),
        "fc_b": jax.random.uniform(k2, (classes,), jnp.float32, -kf, kf),
    }


# ----------------------------------------------------------------------------
# Pure-JAX reference (for correctness check)
# ----------------------------------------------------------------------------
def lstm_dir_ref(x_tbd, w_ih, w_hh, b_ih, b_hh, reverse):
    T, B, _ = x_tbd.shape
    H = w_hh.shape[1]
    wihT, whhT, bias = w_ih.T, w_hh.T, (b_ih + b_hh)[None, :]
    xs = x_tbd[::-1] if reverse else x_tbd

    def step(carry, x_t):
        h, c = carry
        gates = (
            jnp.dot(x_t, wihT, precision=lax.Precision.HIGHEST)
            + jnp.dot(h, whhT, precision=lax.Precision.HIGHEST)
            + bias
        )
        i = jax.nn.sigmoid(gates[:, :H])
        f = jax.nn.sigmoid(gates[:, H:2 * H])
        g = jnp.tanh(gates[:, 2 * H:3 * H])
        o = jax.nn.sigmoid(gates[:, 3 * H:])
        c = f * c + i * g
        h = o * jnp.tanh(c)
        return (h, c), h

    z = jnp.zeros((B, H), jnp.float32)
    _, ys = lax.scan(step, (z, z), xs)
    return ys[::-1] if reverse else ys


def glove_forward_ref(x, params):
    x = x[:, :-1, :]
    h = jnp.transpose(x, (1, 0, 2))
    for layer in params["lstm"]:
        fwd = lstm_dir_ref(h, *layer["fwd"], reverse=False)
        bwd = lstm_dir_ref(h, *layer["bwd"], reverse=True)
        h = jnp.concatenate([fwd, bwd], axis=-1)
    return (
        jnp.dot(h[-1], params["fc_w"].T, precision=lax.Precision.HIGHEST)
        + params["fc_b"]
    )


# ----------------------------------------------------------------------------
if __name__ == "__main__":
    B, T, DIM = 2, 8, 16
    CLASSES, UNITS, LAYERS = 4, 32, 2

    key = jax.random.PRNGKey(0)
    kx, kp = jax.random.split(key)
    x = jax.random.normal(kx, (B, T, DIM), jnp.float32)
    params = init_params(kp, DIM, CLASSES, UNITS, LAYERS)
    packed = pack_params(params)          # one-time transposes / bias / block-diag

    out = jax.block_until_ready(glove_forward(x, packed))
    ref = jax.block_until_ready(glove_forward_ref(x, params))

    assert out.shape == (B, CLASSES), out.shape
    assert jnp.allclose(out, ref, rtol=2e-3, atol=2e-3), (out, ref)
    print("KERNEL_OK")
</pallas_src>

<mosaic_0001>
module attributes {stable_mosaic.version = 11 : i64} {
  func.func @glove_fused_kernel(%arg0: memref<14x16xf32, #tpu.memory_space<vmem>>, %arg1: memref<16x256xf32, #tpu.memory_space<vmem>>, %arg2: memref<1x256xf32, #tpu.memory_space<vmem>>, %arg3: memref<64x256xf32, #tpu.memory_space<vmem>>, %arg4: memref<64x256xf32, #tpu.memory_space<vmem>>, %arg5: memref<1x256xf32, #tpu.memory_space<vmem>>, %arg6: memref<32x128xf32, #tpu.memory_space<vmem>>, %arg7: memref<64x4xf32, #tpu.memory_space<vmem>>, %arg8: memref<1x4xf32, #tpu.memory_space<vmem>>, %arg9: memref<2x4xf32, #tpu.memory_space<vmem>>) attributes {dimension_semantics = [], scalar_prefetch = 0 : i64, scratch_operands = 0 : i64, tpu.core_type = #tpu.core_type<tc>} {
    %c0 = arith.constant 0 : index
    %c0_0 = arith.constant 0 : index
    %0 = vector.load %arg1[%c0, %c0_0] : memref<16x256xf32, #tpu.memory_space<vmem>>, vector<16x256xf32>
    %c0_1 = arith.constant 0 : index
    %c0_2 = arith.constant 0 : index
    %1 = vector.load %arg0[%c0_1, %c0_2] : memref<14x16xf32, #tpu.memory_space<vmem>>, vector<14x16xf32>
    %cst = arith.constant dense<0.000000e+00> : vector<14x256xf32>
    %2 = tpu.matmul %1, %0, %cst {dimension_numbers = #tpu.dot_dimension_numbers<[1], [0], [0], [1], [0, 0, 1, 1], [], []>} : vector<14x16xf32>, vector<16x256xf32>, vector<14x256xf32> -> vector<14x256xf32>
    %c0_3 = arith.constant 0 : index
    %c0_4 = arith.constant 0 : index
    %3 = vector.load %arg2[%c0_3, %c0_4] : memref<1x256xf32, #tpu.memory_space<vmem>>, vector<1x256xf32>
    %4 = vector.broadcast %3 : vector<1x256xf32> to vector<14x256xf32>
    %5 = arith.addf %2, %4 : vector<14x256xf32>
    %6 = vector.extract_strided_slice %5 {offsets = [0, 0], sizes = [2, 256], strides = [1, 1]} : vector<14x256xf32> to vector<2x256xf32>
    %7 = vector.extract_strided_slice %5 {offsets = [2, 0], sizes = [2, 256], strides = [1, 1]} : vector<14x256xf32> to vector<2x256xf32>
    %8 = vector.extract_strided_slice %5 {offsets = [4, 0], sizes = [2, 256], strides = [1, 1]} : vector<14x256xf32> to vector<2x256xf32>
    %9 = vector.extract_strided_slice %5 {offsets = [6, 0], sizes = [2, 256], strides = [1, 1]} : vector<14x256xf32> to vector<2x256xf32>
    %10 = vector.extract_strided_slice %5 {offsets = [8, 0], sizes = [2, 256], strides = [1, 1]} : vector<14x256xf32> to vector<2x256xf32>
    %11 = vector.extract_strided_slice %5 {offsets = [10, 0], sizes = [2, 256], strides = [1, 1]} : vector<14x256xf32> to vector<2x256xf32>
    %12 = vector.extract_strided_slice %5 {offsets = [12, 0], sizes = [2, 256], strides = [1, 1]} : vector<14x256xf32> to vector<2x256xf32>
    %13 = vector.extract_strided_slice %6 {offsets = [0, 0], sizes = [2, 128], strides = [1, 1]} : vector<2x256xf32> to vector<2x128xf32>
    %14 = vector.extract_strided_slice %7 {offsets = [0, 0], sizes = [2, 128], strides = [1, 1]} : vector<2x256xf32> to vector<2x128xf32>
    %15 = vector.extract_strided_slice %8 {offsets = [0, 0], sizes = [2, 128], strides = [1, 1]} : vector<2x256xf32> to vector<2x128xf32>
    %16 = vector.extract_strided_slice %9 {offsets = [0, 0], sizes = [2, 128], strides = [1, 1]} : vector<2x256xf32> to vector<2x128xf32>
    %17 = vector.extract_strided_slice %10 {offsets = [0, 0], sizes = [2, 128], strides = [1, 1]} : vector<2x256xf32> to vector<2x128xf32>
    %18 = vector.extract_strided_slice %11 {offsets = [0, 0], sizes = [2, 128], strides = [1, 1]} : vector<2x256xf32> to vector<2x128xf32>
    %19 = vector.extract_strided_slice %12 {offsets = [0, 0], sizes = [2, 128], strides = [1, 1]} : vector<2x256xf32> to vector<2x128xf32>
    %20 = vector.extract_strided_slice %6 {offsets = [0, 128], sizes = [2, 128], strides = [1, 1]} : vector<2x256xf32> to vector<2x128xf32>
    %21 = vector.extract_strided_slice %7 {offsets = [0, 128], sizes = [2, 128], strides = [1, 1]} : vector<2x256xf32> to vector<2x128xf32>
    %22 = vector.extract_strided_slice %8 {offsets = [0, 128], sizes = [2, 128], strides = [1, 1]} : vector<2x256xf32> to vector<2x128xf32>
    %23 = vector.extract_strided_slice %9 {offsets = [0, 128], sizes = [2, 128], strides = [1, 1]} : vector<2x256xf32> to vector<2x128xf32>
    %24 = vector.extract_strided_slice %10 {offsets = [0, 128], sizes = [2, 128], strides = [1, 1]} : vector<2x256xf32> to vector<2x128xf32>
    %25 = vector.extract_strided_slice %11 {offsets = [0, 128], sizes = [2, 128], strides = [1, 1]} : vector<2x256xf32> to vector<2x128xf32>
    %26 = vector.extract_strided_slice %12 {offsets = [0, 128], sizes = [2, 128], strides = [1, 1]} : vector<2x256xf32> to vector<2x128xf32>
    %c0_5 = arith.constant 0 : index
    %c0_6 = arith.constant 0 : index
    %27 = vector.load %arg3[%c0_5, %c0_6] : memref<64x256xf32, #tpu.memory_space<vmem>>, vector<64x256xf32>
    %cst_7 = arith.constant 0.000000e+00 : f32
    %28 = vector.broadcast %cst_7 : f32 to vector<2x32xf32>
    %29 = tpu.concatenate %28, %28 in 1 : vector<2x32xf32>, vector<2x32xf32> -> vector<2x64xf32>
    %cst_8 = arith.constant dense<0.000000e+00> : vector<2x256xf32>
    %30 = tpu.matmul %29, %27, %cst_8 {dimension_numbers = #tpu.dot_dimension_numbers<[1], [0], [0], [1], [0, 0, 1, 1], [], []>} : vector<2x64xf32>, vector<64x256xf32>, vector<2x256xf32> -> vector<2x256xf32>
    %31 = vector.extract_strided_slice %30 {offsets = [0, 0], sizes = [2, 128], strides = [1, 1]} : vector<2x256xf32> to vector<2x128xf32>
    %32 = arith.addf %13, %31 : vector<2x128xf32>
    %33 = vector.extract_strided_slice %32 {offsets = [0, 0], sizes = [2, 32], strides = [1, 1]} : vector<2x128xf32> to vector<2x32xf32>
    %34 = arith.negf %33 : vector<2x32xf32>
    %35 = math.exp %34 : vector<2x32xf32>
    %cst_9 = arith.constant 1.000000e+00 : f32
    %36 = vector.broadcast %cst_9 : f32 to vector<2x32xf32>
    %37 = arith.addf %36, %35 : vector<2x32xf32>
    %38 = arith.divf %36, %37 : vector<2x32xf32>
    %39 = vector.extract_strided_slice %32 {offsets = [0, 32], sizes = [2, 32], strides = [1, 1]} : vector<2x128xf32> to vector<2x32xf32>
    %40 = arith.negf %39 : vector<2x32xf32>
    %41 = math.exp %40 : vector<2x32xf32>
    %cst_10 = arith.constant 1.000000e+00 : f32
    %42 = vector.broadcast %cst_10 : f32 to vector<2x32xf32>
    %43 = arith.addf %42, %41 : vector<2x32xf32>
    %44 = arith.divf %42, %43 : vector<2x32xf32>
    %45 = vector.extract_strided_slice %32 {offsets = [0, 64], sizes = [2, 32], strides = [1, 1]} : vector<2x128xf32> to vector<2x32xf32>
    %46 = math.tanh %45 : vector<2x32xf32>
    %47 = vector.extract_strided_slice %32 {offsets = [0, 96], sizes = [2, 32], strides = [1, 1]} : vector<2x128xf32> to vector<2x32xf32>
    %48 = arith.negf %47 : vector<2x32xf32>
    %49 = math.exp %48 : vector<2x32xf32>
    %cst_11 = arith.constant 1.000000e+00 : f32
    %50 = vector.broadcast %cst_11 : f32 to vector<2x32xf32>
    %51 = arith.addf %50, %49 : vector<2x32xf32>
    %52 = arith.divf %50, %51 : vector<2x32xf32>
    %53 = arith.mulf %44, %28 : vector<2x32xf32>
    %54 = arith.mulf %38, %46 : vector<2x32xf32>
    %55 = arith.addf %53, %54 : vector<2x32xf32>
    %56 = math.tanh %55 : vector<2x32xf32>
    %57 = arith.mulf %52, %56 : vector<2x32xf32>
    %58 = vector.extract_strided_slice %30 {offsets = [0, 128], sizes = [2, 128], strides = [1, 1]} : vector<2x256xf32> to vector<2x128xf32>
    %59 = arith.addf %26, %58 : vector<2x128xf32>
    %60 = vector.extract_strided_slice %59 {offsets = [0, 0], sizes = [2, 32], strides = [1, 1]} : vector<2x128xf32> to vector<2x32xf32>
    %61 = arith.negf %60 : vector<2x32xf32>
    %62 = math.exp %61 : vector<2x32xf32>
    %cst_12 = arith.constant 1.000000e+00 : f32
    %63 = vector.broadcast %cst_12 : f32 to vector<2x32xf32>
    %64 = arith.addf %63, %62 : vector<2x32xf32>
    %65 = arith.divf %63, %64 : vector<2x32xf32>
    %66 = vector.extract_strided_slice %59 {offsets = [0, 32], sizes = [2, 32], strides = [1, 1]} : vector<2x128xf32> to vector<2x32xf32>
    %67 = arith.negf %66 : vector<2x32xf32>
    %68 = math.exp %67 : vector<2x32xf32>
    %cst_13 = arith.constant 1.000000e+00 : f32
    %69 = vector.broadcast %cst_13 : f32 to vector<2x32xf32>
    %70 = arith.addf %69, %68 : vector<2x32xf32>
    %71 = arith.divf %69, %70 : vector<2x32xf32>
    %72 = vector.extract_strided_slice %59 {offsets = [0, 64], sizes = [2, 32], strides = [1, 1]} : vector<2x128xf32> to vector<2x32xf32>
    %73 = math.tanh %72 : vector<2x32xf32>
    %74 = vector.extract_strided_slice %59 {offsets = [0, 96], sizes = [2, 32], strides = [1, 1]} : vector<2x128xf32> to vector<2x32xf32>
    %75 = arith.negf %74 : vector<2x32xf32>
    %76 = math.exp %75 : vector<2x32xf32>
    %cst_14 = arith.constant 1.000000e+00 : f32
    %77 = vector.broadcast %cst_14 : f32 to vector<2x32xf32>
    %78 = arith.addf %77, %76 : vector<2x32xf32>
    %79 = arith.divf %77, %78 : vector<2x32xf32>
    %80 = arith.mulf %71, %28 : vector<2x32xf32>
    %81 = arith.mulf %65, %73 : vector<2x32xf32>
    %82 = arith.addf %80, %81 : vector<2x32xf32>
    %83 = math.tanh %82 : vector<2x32xf32>
    %84 = arith.mulf %79, %83 : vector<2x32xf32>
    %85 = tpu.concatenate %57, %84 in 1 : vector<2x32xf32>, vector<2x32xf32> -> vector<2x64xf32>
    %cst_15 = arith.constant dense<0.000000e+00> : vector<2x256xf32>
    %86 = tpu.matmul %85, %27, %cst_15 {dimension_numbers = #tpu.dot_dimension_numbers<[1], [0], [0], [1], [0, 0, 1, 1], [], []>} : vector<2x64xf32>, vector<64x256xf32>, vector<2x256xf32> -> vector<2x256xf32>
    %87 = vector.extract_strided_slice %86 {offsets = [0, 0], sizes = [2, 128], strides = [1, 1]} : vector<2x256xf32> to vector<2x128xf32>
    %88 = arith.addf %14, %87 : vector<2x128xf32>
    %89 = vector.extract_strided_slice %88 {offsets = [0, 0], sizes = [2, 32], strides = [1, 1]} : vector<2x128xf32> to vector<2x32xf32>
    %90 = arith.negf %89 : vector<2x32xf32>
    %91 = math.exp %90 : vector<2x32xf32>
    %cst_16 = arith.constant 1.000000e+00 : f32
    %92 = vector.broadcast %cst_16 : f32 to vector<2x32xf32>
    %93 = arith.addf %92, %91 : vector<2x32xf32>
    %94 = arith.divf %92, %93 : vector<2x32xf32>
    %95 = vector.extract_strided_slice %88 {offsets = [0, 32], sizes = [2, 32], strides = [1, 1]} : vector<2x128xf32> to vector<2x32xf32>
    %96 = arith.negf %95 : vector<2x32xf32>
    %97 = math.exp %96 : vector<2x32xf32>
    %cst_17 = arith.constant 1.000000e+00 : f32
    %98 = vector.broadcast %cst_17 : f32 to vector<2x32xf32>
    %99 = arith.addf %98, %97 : vector<2x32xf32>
    %100 = arith.divf %98, %99 : vector<2x32xf32>
    %101 = vector.extract_strided_slice %88 {offsets = [0, 64], sizes = [2, 32], strides = [1, 1]} : vector<2x128xf32> to vector<2x32xf32>
    %102 = math.tanh %101 : vector<2x32xf32>
    %103 = vector.extract_strided_slice %88 {offsets = [0, 96], sizes = [2, 32], strides = [1, 1]} : vector<2x128xf32> to vector<2x32xf32>
    %104 = arith.negf %103 : vector<2x32xf32>
    %105 = math.exp %104 : vector<2x32xf32>
    %cst_18 = arith.constant 1.000000e+00 : f32
    %106 = vector.broadcast %cst_18 : f32 to vector<2x32xf32>
    %107 = arith.addf %106, %105 : vector<2x32xf32>
    %108 = arith.divf %106, %107 : vector<2x32xf32>
    %109 = arith.mulf %100, %55 : vector<2x32xf32>
    %110 = arith.mulf %94, %102 : vector<2x32xf32>
    %111 = arith.addf %109, %110 : vector<2x32xf32>
    %112 = math.tanh %111 : vector<2x32xf32>
    %113 = arith.mulf %108, %112 : vector<2x32xf32>
    %114 = vector.extract_strided_slice %86 {offsets = [0, 128], sizes = [2, 128], strides = [1, 1]} : vector<2x256xf32> to vector<2x128xf32>
    %115 = arith.addf %25, %114 : vector<2x128xf32>
    %116 = vector.extract_strided_slice %115 {offsets = [0, 0], sizes = [2, 32], strides = [1, 1]} : vector<2x128xf32> to vector<2x32xf32>
    %117 = arith.negf %116 : vector<2x32xf32>
    %118 = math.exp %117 : vector<2x32xf32>
    %cst_19 = arith.constant 1.000000e+00 : f32
    %119 = vector.broadcast %cst_19 : f32 to vector<2x32xf32>
    %120 = arith.addf %119, %118 : vector<2x32xf32>
    %121 = arith.divf %119, %120 : vector<2x32xf32>
    %122 = vector.extract_strided_slice %115 {offsets = [0, 32], sizes = [2, 32], strides = [1, 1]} : vector<2x128xf32> to vector<2x32xf32>
    %123 = arith.negf %122 : vector<2x32xf32>
    %124 = math.exp %123 : vector<2x32xf32>
    %cst_20 = arith.constant 1.000000e+00 : f32
    %125 = vector.broadcast %cst_20 : f32 to vector<2x32xf32>
    %126 = arith.addf %125, %124 : vector<2x32xf32>
    %127 = arith.divf %125, %126 : vector<2x32xf32>
    %128 = vector.extract_strided_slice %115 {offsets = [0, 64], sizes = [2, 32], strides = [1, 1]} : vector<2x128xf32> to vector<2x32xf32>
    %129 = math.tanh %128 : vector<2x32xf32>
    %130 = vector.extract_strided_slice %115 {offsets = [0, 96], sizes = [2, 32], strides = [1, 1]} : vector<2x128xf32> to vector<2x32xf32>
    %131 = arith.negf %130 : vector<2x32xf32>
    %132 = math.exp %131 : vector<2x32xf32>
    %cst_21 = arith.constant 1.000000e+00 : f32
    %133 = vector.broadcast %cst_21 : f32 to vector<2x32xf32>
    %134 = arith.addf %133, %132 : vector<2x32xf32>
    %135 = arith.divf %133, %134 : vector<2x32xf32>
    %136 = arith.mulf %127, %82 : vector<2x32xf32>
    %137 = arith.mulf %121, %129 : vector<2x32xf32>
    %138 = arith.addf %136, %137 : vector<2x32xf32>
    %139 = math.tanh %138 : vector<2x32xf32>
    %140 = arith.mulf %135, %139 : vector<2x32xf32>
    %141 = tpu.concatenate %113, %140 in 1 : vector<2x32xf32>, vector<2x32xf32> -> vector<2x64xf32>
    %cst_22 = arith.constant dense<0.000000e+00> : vector<2x256xf32>
    %142 = tpu.matmul %141, %27, %cst_22 {dimension_numbers = #tpu.dot_dimension_numbers<[1], [0], [0], [1], [0, 0, 1, 1], [], []>} : vector<2x64xf32>, vector<64x256xf32>, vector<2x256xf32> -> vector<2x256xf32>
    %143 = vector.extract_strided_slice %142 {offsets = [0, 0], sizes = [2, 128], strides = [1, 1]} : vector<2x256xf32> to vector<2x128xf32>
    %144 = arith.addf %15, %143 : vector<2x128xf32>
    %145 = vector.extract_strided_slice %144 {offsets = [0, 0], sizes = [2, 32], strides = [1, 1]} : vector<2x128xf32> to vector<2x32xf32>
    %146 = arith.negf %145 : vector<2x32xf32>
    %147 = math.exp %146 : vector<2x32xf32>
    %cst_23 = arith.constant 1.000000e+00 : f32
    %148 = vector.broadcast %cst_23 : f32 to vector<2x32xf32>
    %149 = arith.addf %148, %147 : vector<2x32xf32>
    %150 = arith.divf %148, %149 : vector<2x32xf32>
    %151 = vector.extract_strided_slice %144 {offsets = [0, 32], sizes = [2, 32], strides = [1, 1]} : vector<2x128xf32> to vector<2x32xf32>
    %152 = arith.negf %151 : vector<2x32xf32>
    %153 = math.exp %152 : vector<2x32xf32>
    %cst_24 = arith.constant 1.000000e+00 : f32
    %154 = vector.broadcast %cst_24 : f32 to vector<2x32xf32>
    %155 = arith.addf %154, %153 : vector<2x32xf32>
    %156 = arith.divf %154, %155 : vector<2x32xf32>
    %157 = vector.extract_strided_slice %144 {offsets = [0, 64], sizes = [2, 32], strides = [1, 1]} : vector<2x128xf32> to vector<2x32xf32>
    %158 = math.tanh %157 : vector<2x32xf32>
    %159 = vector.extract_strided_slice %144 {offsets = [0, 96], sizes = [2, 32], strides = [1, 1]} : vector<2x128xf32> to vector<2x32xf32>
    %160 = arith.negf %159 : vector<2x32xf32>
    %161 = math.exp %160 : vector<2x32xf32>
    %cst_25 = arith.constant 1.000000e+00 : f32
    %162 = vector.broadcast %cst_25 : f32 to vector<2x32xf32>
    %163 = arith.addf %162, %161 : vector<2x32xf32>
    %164 = arith.divf %162, %163 : vector<2x32xf32>
    %165 = arith.mulf %156, %111 : vector<2x32xf32>
    %166 = arith.mulf %150, %158 : vector<2x32xf32>
    %167 = arith.addf %165, %166 : vector<2x32xf32>
    %168 = math.tanh %167 : vector<2x32xf32>
    %169 = arith.mulf %164, %168 : vector<2x32xf32>
    %170 = vector.extract_strided_slice %142 {offsets = [0, 128], sizes = [2, 128], strides = [1, 1]} : vector<2x256xf32> to vector<2x128xf32>
    %171 = arith.addf %24, %170 : vector<2x128xf32>
    %172 = vector.extract_strided_slice %171 {offsets = [0, 0], sizes = [2, 32], strides = [1, 1]} : vector<2x128xf32> to vector<2x32xf32>
    %173 = arith.negf %172 : vector<2x32xf32>
    %174 = math.exp %173 : vector<2x32xf32>
    %cst_26 = arith.constant 1.000000e+00 : f32
    %175 = vector.broadcast %cst_26 : f32 to vector<2x32xf32>
    %176 = arith.addf %175, %174 : vector<2x32xf32>
    %177 = arith.divf %175, %176 : vector<2x32xf32>
    %178 = vector.extract_strided_slice %171 {offsets = [0, 32], sizes = [2, 32], strides = [1, 1]} : vector<2x128xf32> to vector<2x32xf32>
    %179 = arith.negf %178 : vector<2x32xf32>
    %180 = math.exp %179 : vector<2x32xf32>
    %cst_27 = arith.constant 1.000000e+00 : f32
    %181 = vector.broadcast %cst_27 : f32 to vector<2x32xf32>
    %182 = arith.addf %181, %180 : vector<2x32xf32>
    %183 = arith.divf %181, %182 : vector<2x32xf32>
    %184 = vector.extract_strided_slice %171 {offsets = [0, 64], sizes = [2, 32], strides = [1, 1]} : vector<2x128xf32> to vector<2x32xf32>
    %185 = math.tanh %184 : vector<2x32xf32>
    %186 = vector.extract_strided_slice %171 {offsets = [0, 96], sizes = [2, 32], strides = [1, 1]} : vector<2x128xf32> to vector<2x32xf32>
    %187 = arith.negf %186 : vector<2x32xf32>
    %188 = math.exp %187 : vector<2x32xf32>
    %cst_28 = arith.constant 1.000000e+00 : f32
    %189 = vector.broadcast %cst_28 : f32 to vector<2x32xf32>
    %190 = arith.addf %189, %188 : vector<2x32xf32>
    %191 = arith.divf %189, %190 : vector<2x32xf32>
    %192 = arith.mulf %183, %138 : vector<2x32xf32>
    %193 = arith.mulf %177, %185 : vector<2x32xf32>
    %194 = arith.addf %192, %193 : vector<2x32xf32>
    %195 = math.tanh %194 : vector<2x32xf32>
    %196 = arith.mulf %191, %195 : vector<2x32xf32>
    %197 = tpu.concatenate %169, %196 in 1 : vector<2x32xf32>, vector<2x32xf32> -> vector<2x64xf32>
    %cst_29 = arith.constant dense<0.000000e+00> : vector<2x256xf32>
    %198 = tpu.matmul %197, %27, %cst_29 {dimension_numbers = #tpu.dot_dimension_numbers<[1], [0], [0], [1], [0, 0, 1, 1], [], []>} : vector<2x64xf32>, vector<64x256xf32>, vector<2x256xf32> -> vector<2x256xf32>
    %199 = vector.extract_strided_slice %198 {offsets = [0, 0], sizes = [2, 128], strides = [1, 1]} : vector<2x256xf32> to vector<2x128xf32>
    %200 = arith.addf %16, %199 : vector<2x128xf32>
    %201 = vector.extract_strided_slice %200 {offsets = [0, 0], sizes = [2, 32], strides = [1, 1]} : vector<2x128xf32> to vector<2x32xf32>
    %202 = arith.negf %201 : vector<2x32xf32>
    %203 = math.exp %202 : vector<2x32xf32>
    %cst_30 = arith.constant 1.000000e+00 : f32
    %204 = vector.broadcast %cst_30 : f32 to vector<2x32xf32>
    %205 = arith.addf %204, %203 : vector<2x32xf32>
    %206 = arith.divf %204, %205 : vector<2x32xf32>
    %207 = vector.extract_strided_slice %200 {offsets = [0, 32], sizes = [2, 32], strides = [1, 1]} : vector<2x128xf32> to vector<2x32xf32>
    %208 = arith.negf %207 : vector<2x32xf32>
    %209 = math.exp %208 : vector<2x32xf32>
    %cst_31 = arith.constant 1.000000e+00 : f32
    %210 = vector.broadcast %cst_31 : f32 to vector<2x32xf32>
    %211 = arith.addf %210, %209 : vector<2x32xf32>
    %212 = arith.divf %210, %211 : vector<2x32xf32>
    %213 = vector.extract_strided_slice %200 {offsets = [0, 64], sizes = [2, 32], strides = [1, 1]} : vector<2x128xf32> to vector<2x32xf32>
    %214 = math.tanh %213 : vector<2x32xf32>
    %215 = vector.extract_strided_slice %200 {offsets = [0, 96], sizes = [2, 32], strides = [1, 1]} : vector<2x128xf32> to vector<2x32xf32>
    %216 = arith.negf %215 : vector<2x32xf32>
    %217 = math.exp %216 : vector<2x32xf32>
    %cst_32 = arith.constant 1.000000e+00 : f32
    %218 = vector.broadcast %cst_32 : f32 to vector<2x32xf32>
    %219 = arith.addf %218, %217 : vector<2x32xf32>
    %220 = arith.divf %218, %219 : vector<2x32xf32>
    %221 = arith.mulf %212, %167 : vector<2x32xf32>
    %222 = arith.mulf %206, %214 : vector<2x32xf32>
    %223 = arith.addf %221, %222 : vector<2x32xf32>
    %224 = math.tanh %223 : vector<2x32xf32>
    %225 = arith.mulf %220, %224 : vector<2x32xf32>
    %226 = vector.extract_strided_slice %198 {offsets = [0, 128], sizes = [2, 128], strides = [1, 1]} : vector<2x256xf32> to vector<2x128xf32>
    %227 = arith.addf %23, %226 : vector<2x128xf32>
    %228 = vector.extract_strided_slice %227 {offsets = [0, 0], sizes = [2, 32], strides = [1, 1]} : vector<2x128xf32> to vector<2x32xf32>
    %229 = arith.negf %228 : vector<2x32xf32>
    %230 = math.exp %229 : vector<2x32xf32>
    %cst_33 = arith.constant 1.000000e+00 : f32
    %231 = vector.broadcast %cst_33 : f32 to vector<2x32xf32>
    %232 = arith.addf %231, %230 : vector<2x32xf32>
    %233 = arith.divf %231, %232 : vector<2x32xf32>
    %234 = vector.extract_strided_slice %227 {offsets = [0, 32], sizes = [2, 32], strides = [1, 1]} : vector<2x128xf32> to vector<2x32xf32>
    %235 = arith.negf %234 : vector<2x32xf32>
    %236 = math.exp %235 : vector<2x32xf32>
    %cst_34 = arith.constant 1.000000e+00 : f32
    %237 = vector.broadcast %cst_34 : f32 to vector<2x32xf32>
    %238 = arith.addf %237, %236 : vector<2x32xf32>
    %239 = arith.divf %237, %238 : vector<2x32xf32>
    %240 = vector.extract_strided_slice %227 {offsets = [0, 64], sizes = [2, 32], strides = [1, 1]} : vector<2x128xf32> to vector<2x32xf32>
    %241 = math.tanh %240 : vector<2x32xf32>
    %242 = vector.extract_strided_slice %227 {offsets = [0, 96], sizes = [2, 32], strides = [1, 1]} : vector<2x128xf32> to vector<2x32xf32>
    %243 = arith.negf %242 : vector<2x32xf32>
    %244 = math.exp %243 : vector<2x32xf32>
    %cst_35 = arith.constant 1.000000e+00 : f32
    %245 = vector.broadcast %cst_35 : f32 to vector<2x32xf32>
    %246 = arith.addf %245, %244 : vector<2x32xf32>
    %247 = arith.divf %245, %246 : vector<2x32xf32>
    %248 = arith.mulf %239, %194 : vector<2x32xf32>
    %249 = arith.mulf %233, %241 : vector<2x32xf32>
    %250 = arith.addf %248, %249 : vector<2x32xf32>
    %251 = math.tanh %250 : vector<2x32xf32>
    %252 = arith.mulf %247, %251 : vector<2x32xf32>
    %253 = tpu.concatenate %225, %252 in 1 : vector<2x32xf32>, vector<2x32xf32> -> vector<2x64xf32>
    %cst_36 = arith.constant dense<0.000000e+00> : vector<2x256xf32>
    %254 = tpu.matmul %253, %27, %cst_36 {dimension_numbers = #tpu.dot_dimension_numbers<[1], [0], [0], [1], [0, 0, 1, 1], [], []>} : vector<2x64xf32>, vector<64x256xf32>, vector<2x256xf32> -> vector<2x256xf32>
    %255 = vector.extract_strided_slice %254 {offsets = [0, 0], sizes = [2, 128], strides = [1, 1]} : vector<2x256xf32> to vector<2x128xf32>
    %256 = arith.addf %17, %255 : vector<2x128xf32>
    %257 = vector.extract_strided_slice %256 {offsets = [0, 0], sizes = [2, 32], strides = [1, 1]} : vector<2x128xf32> to vector<2x32xf32>
    %258 = arith.negf %257 : vector<2x32xf32>
    %259 = math.exp %258 : vector<2x32xf32>
    %cst_37 = arith.constant 1.000000e+00 : f32
    %260 = vector.broadcast %cst_37 : f32 to vector<2x32xf32>
    %261 = arith.addf %260, %259 : vector<2x32xf32>
    %262 = arith.divf %260, %261 : vector<2x32xf32>
    %263 = vector.extract_strided_slice %256 {offsets = [0, 32], sizes = [2, 32], strides = [1, 1]} : vector<2x128xf32> to vector<2x32xf32>
    %264 = arith.negf %263 : vector<2x32xf32>
    %265 = math.exp %264 : vector<2x32xf32>
    %cst_38 = arith.constant 1.000000e+00 : f32
    %266 = vector.broadcast %cst_38 : f32 to vector<2x32xf32>
    %267 = arith.addf %266, %265 : vector<2x32xf32>
    %268 = arith.divf %266, %267 : vector<2x32xf32>
    %269 = vector.extract_strided_slice %256 {offsets = [0, 64], sizes = [2, 32], strides = [1, 1]} : vector<2x128xf32> to vector<2x32xf32>
    %270 = math.tanh %269 : vector<2x32xf32>
    %271 = vector.extract_strided_slice %256 {offsets = [0, 96], sizes = [2, 32], strides = [1, 1]} : vector<2x128xf32> to vector<2x32xf32>
    %272 = arith.negf %271 : vector<2x32xf32>
    %273 = math.exp %272 : vector<2x32xf32>
    %cst_39 = arith.constant 1.000000e+00 : f32
    %274 = vector.broadcast %cst_39 : f32 to vector<2x32xf32>
    %275 = arith.addf %274, %273 : vector<2x32xf32>
    %276 = arith.divf %274, %275 : vector<2x32xf32>
    %277 = arith.mulf %268, %223 : vector<2x32xf32>
    %278 = arith.mulf %262, %270 : vector<2x32xf32>
    %279 = arith.addf %277, %278 : vector<2x32xf32>
    %280 = math.tanh %279 : vector<2x32xf32>
    %281 = arith.mulf %276, %280 : vector<2x32xf32>
    %282 = vector.extract_strided_slice %254 {offsets = [0, 128], sizes = [2, 128], strides = [1, 1]} : vector<2x256xf32> to vector<2x128xf32>
    %283 = arith.addf %22, %282 : vector<2x128xf32>
    %284 = vector.extract_strided_slice %283 {offsets = [0, 0], sizes = [2, 32], strides = [1, 1]} : vector<2x128xf32> to vector<2x32xf32>
    %285 = arith.negf %284 : vector<2x32xf32>
    %286 = math.exp %285 : vector<2x32xf32>
    %cst_40 = arith.constant 1.000000e+00 : f32
    %287 = vector.broadcast %cst_40 : f32 to vector<2x32xf32>
    %288 = arith.addf %287, %286 : vector<2x32xf32>
    %289 = arith.divf %287, %288 : vector<2x32xf32>
    %290 = vector.extract_strided_slice %283 {offsets = [0, 32], sizes = [2, 32], strides = [1, 1]} : vector<2x128xf32> to vector<2x32xf32>
    %291 = arith.negf %290 : vector<2x32xf32>
    %292 = math.exp %291 : vector<2x32xf32>
    %cst_41 = arith.constant 1.000000e+00 : f32
    %293 = vector.broadcast %cst_41 : f32 to vector<2x32xf32>
    %294 = arith.addf %293, %292 : vector<2x32xf32>
    %295 = arith.divf %293, %294 : vector<2x32xf32>
    %296 = vector.extract_strided_slice %283 {offsets = [0, 64], sizes = [2, 32], strides = [1, 1]} : vector<2x128xf32> to vector<2x32xf32>
    %297 = math.tanh %296 : vector<2x32xf32>
    %298 = vector.extract_strided_slice %283 {offsets = [0, 96], sizes = [2, 32], strides = [1, 1]} : vector<2x128xf32> to vector<2x32xf32>
    %299 = arith.negf %298 : vector<2x32xf32>
    %300 = math.exp %299 : vector<2x32xf32>
    %cst_42 = arith.constant 1.000000e+00 : f32
    %301 = vector.broadcast %cst_42 : f32 to vector<2x32xf32>
    %302 = arith.addf %301, %300 : vector<2x32xf32>
    %303 = arith.divf %301, %302 : vector<2x32xf32>
    %304 = arith.mulf %295, %250 : vector<2x32xf32>
    %305 = arith.mulf %289, %297 : vector<2x32xf32>
    %306 = arith.addf %304, %305 : vector<2x32xf32>
    %307 = math.tanh %306 : vector<2x32xf32>
    %308 = arith.mulf %303, %307 : vector<2x32xf32>
    %309 = tpu.concatenate %281, %308 in 1 : vector<2x32xf32>, vector<2x32xf32> -> vector<2x64xf32>
    %cst_43 = arith.constant dense<0.000000e+00> : vector<2x256xf32>
    %310 = tpu.matmul %309, %27, %cst_43 {dimension_numbers = #tpu.dot_dimension_numbers<[1], [0], [0], [1], [0, 0, 1, 1], [], []>} : vector<2x64xf32>, vector<64x256xf32>, vector<2x256xf32> -> vector<2x256xf32>
    %311 = vector.extract_strided_slice %310 {offsets = [0, 0], sizes = [2, 128], strides = [1, 1]} : vector<2x256xf32> to vector<2x128xf32>
    %312 = arith.addf %18, %311 : vector<2x128xf32>
    %313 = vector.extract_strided_slice %312 {offsets = [0, 0], sizes = [2, 32], strides = [1, 1]} : vector<2x128xf32> to vector<2x32xf32>
    %314 = arith.negf %313 : vector<2x32xf32>
    %315 = math.exp %314 : vector<2x32xf32>
    %cst_44 = arith.constant 1.000000e+00 : f32
    %316 = vector.broadcast %cst_44 : f32 to vector<2x32xf32>
    %317 = arith.addf %316, %315 : vector<2x32xf32>
    %318 = arith.divf %316, %317 : vector<2x32xf32>
    %319 = vector.extract_strided_slice %312 {offsets = [0, 32], sizes = [2, 32], strides = [1, 1]} : vector<2x128xf32> to vector<2x32xf32>
    %320 = arith.negf %319 : vector<2x32xf32>
    %321 = math.exp %320 : vector<2x32xf32>
    %cst_45 = arith.constant 1.000000e+00 : f32
    %322 = vector.broadcast %cst_45 : f32 to vector<2x32xf32>
    %323 = arith.addf %322, %321 : vector<2x32xf32>
    %324 = arith.divf %322, %323 : vector<2x32xf32>
    %325 = vector.extract_strided_slice %312 {offsets = [0, 64], sizes = [2, 32], strides = [1, 1]} : vector<2x128xf32> to vector<2x32xf32>
    %326 = math.tanh %325 : vector<2x32xf32>
    %327 = vector.extract_strided_slice %312 {offsets = [0, 96], sizes = [2, 32], strides = [1, 1]} : vector<2x128xf32> to vector<2x32xf32>
    %328 = arith.negf %327 : vector<2x32xf32>
    %329 = math.exp %328 : vector<2x32xf32>
    %cst_46 = arith.constant 1.000000e+00 : f32
    %330 = vector.broadcast %cst_46 : f32 to vector<2x32xf32>
    %331 = arith.addf %330, %329 : vector<2x32xf32>
    %332 = arith.divf %330, %331 : vector<2x32xf32>
    %333 = arith.mulf %324, %279 : vector<2x32xf32>
    %334 = arith.mulf %318, %326 : vector<2x32xf32>
    %335 = arith.addf %333, %334 : vector<2x32xf32>
    %336 = math.tanh %335 : vector<2x32xf32>
    %337 = arith.mulf %332, %336 : vector<2x32xf32>
    %338 = vector.extract_strided_slice %310 {offsets = [0, 128], sizes = [2, 128], strides = [1, 1]} : vector<2x256xf32> to vector<2x128xf32>
    %339 = arith.addf %21, %338 : vector<2x128xf32>
    %340 = vector.extract_strided_slice %339 {offsets = [0, 0], sizes = [2, 32], strides = [1, 1]} : vector<2x128xf32> to vector<2x32xf32>
    %341 = arith.negf %340 : vector<2x32xf32>
    %342 = math.exp %341 : vector<2x32xf32>
    %cst_47 = arith.constant 1.000000e+00 : f32
    %343 = vector.broadcast %cst_47 : f32 to vector<2x32xf32>
    %344 = arith.addf %343, %342 : vector<2x32xf32>
    %345 = arith.divf %343, %344 : vector<2x32xf32>
    %346 = vector.extract_strided_slice %339 {offsets = [0, 32], sizes = [2, 32], strides = [1, 1]} : vector<2x128xf32> to vector<2x32xf32>
    %347 = arith.negf %346 : vector<2x32xf32>
    %348 = math.exp %347 : vector<2x32xf32>
    %cst_48 = arith.constant 1.000000e+00 : f32
    %349 = vector.broadcast %cst_48 : f32 to vector<2x32xf32>
    %350 = arith.addf %349, %348 : vector<2x32xf32>
    %351 = arith.divf %349, %350 : vector<2x32xf32>
    %352 = vector.extract_strided_slice %339 {offsets = [0, 64], sizes = [2, 32], strides = [1, 1]} : vector<2x128xf32> to vector<2x32xf32>
    %353 = math.tanh %352 : vector<2x32xf32>
    %354 = vector.extract_strided_slice %339 {offsets = [0, 96], sizes = [2, 32], strides = [1, 1]} : vector<2x128xf32> to vector<2x32xf32>
    %355 = arith.negf %354 : vector<2x32xf32>
    %356 = math.exp %355 : vector<2x32xf32>
    %cst_49 = arith.constant 1.000000e+00 : f32
    %357 = vector.broadcast %cst_49 : f32 to vector<2x32xf32>
    %358 = arith.addf %357, %356 : vector<2x32xf32>
    %359 = arith.divf %357, %358 : vector<2x32xf32>
    %360 = arith.mulf %351, %306 : vector<2x32xf32>
    %361 = arith.mulf %345, %353 : vector<2x32xf32>
    %362 = arith.addf %360, %361 : vector<2x32xf32>
    %363 = math.tanh %362 : vector<2x32xf32>
    %364 = arith.mulf %359, %363 : vector<2x32xf32>
    %365 = tpu.concatenate %337, %364 in 1 : vector<2x32xf32>, vector<2x32xf32> -> vector<2x64xf32>
    %cst_50 = arith.constant dense<0.000000e+00> : vector<2x256xf32>
    %366 = tpu.matmul %365, %27, %cst_50 {dimension_numbers = #tpu.dot_dimension_numbers<[1], [0], [0], [1], [0, 0, 1, 1], [], []>} : vector<2x64xf32>, vector<64x256xf32>, vector<2x256xf32> -> vector<2x256xf32>
    %367 = vector.extract_strided_slice %366 {offsets = [0, 0], sizes = [2, 128], strides = [1, 1]} : vector<2x256xf32> to vector<2x128xf32>
    %368 = arith.addf %19, %367 : vector<2x128xf32>
    %369 = vector.extract_strided_slice %368 {offsets = [0, 0], sizes = [2, 32], strides = [1, 1]} : vector<2x128xf32> to vector<2x32xf32>
    %370 = arith.negf %369 : vector<2x32xf32>
    %371 = math.exp %370 : vector<2x32xf32>
    %cst_51 = arith.constant 1.000000e+00 : f32
    %372 = vector.broadcast %cst_51 : f32 to vector<2x32xf32>
    %373 = arith.addf %372, %371 : vector<2x32xf32>
    %374 = arith.divf %372, %373 : vector<2x32xf32>
    %375 = vector.extract_strided_slice %368 {offsets = [0, 32], sizes = [2, 32], strides = [1, 1]} : vector<2x128xf32> to vector<2x32xf32>
    %376 = arith.negf %375 : vector<2x32xf32>
    %377 = math.exp %376 : vector<2x32xf32>
    %cst_52 = arith.constant 1.000000e+00 : f32
    %378 = vector.broadcast %cst_52 : f32 to vector<2x32xf32>
    %379 = arith.addf %378, %377 : vector<2x32xf32>
    %380 = arith.divf %378, %379 : vector<2x32xf32>
    %381 = vector.extract_strided_slice %368 {offsets = [0, 64], sizes = [2, 32], strides = [1, 1]} : vector<2x128xf32> to vector<2x32xf32>
    %382 = math.tanh %381 : vector<2x32xf32>
    %383 = vector.extract_strided_slice %368 {offsets = [0, 96], sizes = [2, 32], strides = [1, 1]} : vector<2x128xf32> to vector<2x32xf32>
    %384 = arith.negf %383 : vector<2x32xf32>
    %385 = math.exp %384 : vector<2x32xf32>
    %cst_53 = arith.constant 1.000000e+00 : f32
    %386 = vector.broadcast %cst_53 : f32 to vector<2x32xf32>
    %387 = arith.addf %386, %385 : vector<2x32xf32>
    %388 = arith.divf %386, %387 : vector<2x32xf32>
    %389 = arith.mulf %380, %335 : vector<2x32xf32>
    %390 = arith.mulf %374, %382 : vector<2x32xf32>
    %391 = arith.addf %389, %390 : vector<2x32xf32>
    %392 = math.tanh %391 : vector<2x32xf32>
    %393 = arith.mulf %388, %392 : vector<2x32xf32>
    %394 = vector.extract_strided_slice %366 {offsets = [0, 128], sizes = [2, 128], strides = [1, 1]} : vector<2x256xf32> to vector<2x128xf32>
    %395 = arith.addf %20, %394 : vector<2x128xf32>
    %396 = vector.extract_strided_slice %395 {offsets = [0, 0], sizes = [2, 32], strides = [1, 1]} : vector<2x128xf32> to vector<2x32xf32>
    %397 = arith.negf %396 : vector<2x32xf32>
    %398 = math.exp %397 : vector<2x32xf32>
    %cst_54 = arith.constant 1.000000e+00 : f32
    %399 = vector.broadcast %cst_54 : f32 to vector<2x32xf32>
    %400 = arith.addf %399, %398 : vector<2x32xf32>
    %401 = arith.divf %399, %400 : vector<2x32xf32>
    %402 = vector.extract_strided_slice %395 {offsets = [0, 32], sizes = [2, 32], strides = [1, 1]} : vector<2x128xf32> to vector<2x32xf32>
    %403 = arith.negf %402 : vector<2x32xf32>
    %404 = math.exp %403 : vector<2x32xf32>
    %cst_55 = arith.constant 1.000000e+00 : f32
    %405 = vector.broadcast %cst_55 : f32 to vector<2x32xf32>
    %406 = arith.addf %405, %404 : vector<2x32xf32>
    %407 = arith.divf %405, %406 : vector<2x32xf32>
    %408 = vector.extract_strided_slice %395 {offsets = [0, 64], sizes = [2, 32], strides = [1, 1]} : vector<2x128xf32> to vector<2x32xf32>
    %409 = math.tanh %408 : vector<2x32xf32>
    %410 = vector.extract_strided_slice %395 {offsets = [0, 96], sizes = [2, 32], strides = [1, 1]} : vector<2x128xf32> to vector<2x32xf32>
    %411 = arith.negf %410 : vector<2x32xf32>
    %412 = math.exp %411 : vector<2x32xf32>
    %cst_56 = arith.constant 1.000000e+00 : f32
    %413 = vector.broadcast %cst_56 : f32 to vector<2x32xf32>
    %414 = arith.addf %413, %412 : vector<2x32xf32>
    %415 = arith.divf %413, %414 : vector<2x32xf32>
    %416 = arith.mulf %407, %362 : vector<2x32xf32>
    %417 = arith.mulf %401, %409 : vector<2x32xf32>
    %418 = arith.addf %416, %417 : vector<2x32xf32>
    %419 = math.tanh %418 : vector<2x32xf32>
    %420 = arith.mulf %415, %419 : vector<2x32xf32>
    %c0_57 = arith.constant 0 : index
    %c0_58 = arith.constant 0 : index
    %421 = vector.load %arg4[%c0_57, %c0_58] : memref<64x256xf32, #tpu.memory_space<vmem>>, vector<64x256xf32>
    %422 = vector.extract_strided_slice %421 {offsets = [0, 0], sizes = [32, 256], strides = [1, 1]} : vector<64x256xf32> to vector<32x256xf32>
    %423 = vector.extract_strided_slice %421 {offsets = [32, 0], sizes = [32, 256], strides = [1, 1]} : vector<64x256xf32> to vector<32x256xf32>
    %c0_59 = arith.constant 0 : index
    %c0_60 = arith.constant 0 : index
    %424 = vector.load %arg5[%c0_59, %c0_60] : memref<1x256xf32, #tpu.memory_space<vmem>>, vector<1x256xf32>
    %425 = vector.shape_cast %424 : vector<1x256xf32> to vector<1x256xf32>
    %426 = vector.broadcast %425 : vector<1x256xf32> to vector<2x256xf32>
    %cst_61 = arith.constant dense<0.000000e+00> : vector<2x256xf32>
    %427 = tpu.matmul %57, %422, %cst_61 {dimension_numbers = #tpu.dot_dimension_numbers<[1], [0], [0], [1], [0, 0, 1, 1], [], []>} : vector<2x32xf32>, vector<32x256xf32>, vector<2x256xf32> -> vector<2x256xf32>
    %cst_62 = arith.constant dense<0.000000e+00> : vector<2x256xf32>
    %428 = tpu.matmul %420, %423, %cst_62 {dimension_numbers = #tpu.dot_dimension_numbers<[1], [0], [0], [1], [0, 0, 1, 1], [], []>} : vector<2x32xf32>, vector<32x256xf32>, vector<2x256xf32> -> vector<2x256xf32>
    %429 = arith.addf %427, %428 : vector<2x256xf32>
    %430 = arith.addf %429, %426 : vector<2x256xf32>
    %cst_63 = arith.constant dense<0.000000e+00> : vector<2x256xf32>
    %431 = tpu.matmul %113, %422, %cst_63 {dimension_numbers = #tpu.dot_dimension_numbers<[1], [0], [0], [1], [0, 0, 1, 1], [], []>} : vector<2x32xf32>, vector<32x256xf32>, vector<2x256xf32> -> vector<2x256xf32>
    %cst_64 = arith.constant dense<0.000000e+00> : vector<2x256xf32>
    %432 = tpu.matmul %364, %423, %cst_64 {dimension_numbers = #tpu.dot_dimension_numbers<[1], [0], [0], [1], [0, 0, 1, 1], [], []>} : vector<2x32xf32>, vector<32x256xf32>, vector<2x256xf32> -> vector<2x256xf32>
    %433 = arith.addf %431, %432 : vector<2x256xf32>
    %434 = arith.addf %433, %426 : vector<2x256xf32>
    %cst_65 = arith.constant dense<0.000000e+00> : vector<2x256xf32>
    %435 = tpu.matmul %169, %422, %cst_65 {dimension_numbers = #tpu.dot_dimension_numbers<[1], [0], [0], [1], [0, 0, 1, 1], [], []>} : vector<2x32xf32>, vector<32x256xf32>, vector<2x256xf32> -> vector<2x256xf32>
    %cst_66 = arith.constant dense<0.000000e+00> : vector<2x256xf32>
    %436 = tpu.matmul %308, %423, %cst_66 {dimension_numbers = #tpu.dot_dimension_numbers<[1], [0], [0], [1], [0, 0, 1, 1], [], []>} : vector<2x32xf32>, vector<32x256xf32>, vector<2x256xf32> -> vector<2x256xf32>
    %437 = arith.addf %435, %436 : vector<2x256xf32>
    %438 = arith.addf %437, %426 : vector<2x256xf32>
    %cst_67 = arith.constant dense<0.000000e+00> : vector<2x256xf32>
    %439 = tpu.matmul %225, %422, %cst_67 {dimension_numbers = #tpu.dot_dimension_numbers<[1], [0], [0], [1], [0, 0, 1, 1], [], []>} : vector<2x32xf32>, vector<32x256xf32>, vector<2x256xf32> -> vector<2x256xf32>
    %cst_68 = arith.constant dense<0.000000e+00> : vector<2x256xf32>
    %440 = tpu.matmul %252, %423, %cst_68 {dimension_numbers = #tpu.dot_dimension_numbers<[1], [0], [0], [1], [0, 0, 1, 1], [], []>} : vector<2x32xf32>, vector<32x256xf32>, vector<2x256xf32> -> vector<2x256xf32>
    %441 = arith.addf %439, %440 : vector<2x256xf32>
    %442 = arith.addf %441, %426 : vector<2x256xf32>
    %cst_69 = arith.constant dense<0.000000e+00> : vector<2x256xf32>
    %443 = tpu.matmul %281, %422, %cst_69 {dimension_numbers = #tpu.dot_dimension_numbers<[1], [0], [0], [1], [0, 0, 1, 1], [], []>} : vector<2x32xf32>, vector<32x256xf32>, vector<2x256xf32> -> vector<2x256xf32>
    %cst_70 = arith.constant dense<0.000000e+00> : vector<2x256xf32>
    %444 = tpu.matmul %196, %423, %cst_70 {dimension_numbers = #tpu.dot_dimension_numbers<[1], [0], [0], [1], [0, 0, 1, 1], [], []>} : vector<2x32xf32>, vector<32x256xf32>, vector<2x256xf32> -> vector<2x256xf32>
    %445 = arith.addf %443, %444 : vector<2x256xf32>
    %446 = arith.addf %445, %426 : vector<2x256xf32>
    %cst_71 = arith.constant dense<0.000000e+00> : vector<2x256xf32>
    %447 = tpu.matmul %337, %422, %cst_71 {dimension_numbers = #tpu.dot_dimension_numbers<[1], [0], [0], [1], [0, 0, 1, 1], [], []>} : vector<2x32xf32>, vector<32x256xf32>, vector<2x256xf32> -> vector<2x256xf32>
    %cst_72 = arith.constant dense<0.000000e+00> : vector<2x256xf32>
    %448 = tpu.matmul %140, %423, %cst_72 {dimension_numbers = #tpu.dot_dimension_numbers<[1], [0], [0], [1], [0, 0, 1, 1], [], []>} : vector<2x32xf32>, vector<32x256xf32>, vector<2x256xf32> -> vector<2x256xf32>
    %449 = arith.addf %447, %448 : vector<2x256xf32>
    %450 = arith.addf %449, %426 : vector<2x256xf32>
    %cst_73 = arith.constant dense<0.000000e+00> : vector<2x256xf32>
    %451 = tpu.matmul %393, %422, %cst_73 {dimension_numbers = #tpu.dot_dimension_numbers<[1], [0], [0], [1], [0, 0, 1, 1], [], []>} : vector<2x32xf32>, vector<32x256xf32>, vector<2x256xf32> -> vector<2x256xf32>
    %cst_74 = arith.constant dense<0.000000e+00> : vector<2x256xf32>
    %452 = tpu.matmul %84, %423, %cst_74 {dimension_numbers = #tpu.dot_dimension_numbers<[1], [0], [0], [1], [0, 0, 1, 1], [], []>} : vector<2x32xf32>, vector<32x256xf32>, vector<2x256xf32> -> vector<2x256xf32>
    %453 = arith.addf %451, %452 : vector<2x256xf32>
    %454 = arith.addf %453, %426 : vector<2x256xf32>
    %455 = vector.extract_strided_slice %430 {offsets = [0, 0], sizes = [2, 128], strides = [1, 1]} : vector<2x256xf32> to vector<2x128xf32>
    %456 = vector.extract_strided_slice %434 {offsets = [0, 0], sizes = [2, 128], strides = [1, 1]} : vector<2x256xf32> to vector<2x128xf32>
    %457 = vector.extract_strided_slice %438 {offsets = [0, 0], sizes = [2, 128], strides = [1, 1]} : vector<2x256xf32> to vector<2x128xf32>
    %458 = vector.extract_strided_slice %442 {offsets = [0, 0], sizes = [2, 128], strides = [1, 1]} : vector<2x256xf32> to vector<2x128xf32>
    %459 = vector.extract_strided_slice %446 {offsets = [0, 0], sizes = [2, 128], strides = [1, 1]} : vector<2x256xf32> to vector<2x128xf32>
    %460 = vector.extract_strided_slice %450 {offsets = [0, 0], sizes = [2, 128], strides = [1, 1]} : vector<2x256xf32> to vector<2x128xf32>
    %461 = vector.extract_strided_slice %454 {offsets = [0, 0], sizes = [2, 128], strides = [1, 1]} : vector<2x256xf32> to vector<2x128xf32>
    %462 = vector.extract_strided_slice %454 {offsets = [0, 128], sizes = [2, 128], strides = [1, 1]} : vector<2x256xf32> to vector<2x128xf32>
    %cst_75 = arith.constant 0.000000e+00 : f32
    %463 = vector.broadcast %cst_75 : f32 to vector<2x32xf32>
    %c0_76 = arith.constant 0 : index
    %c0_77 = arith.constant 0 : index
    %464 = vector.load %arg6[%c0_76, %c0_77] : memref<32x128xf32, #tpu.memory_space<vmem>>, vector<32x128xf32>
    %cst_78 = arith.constant dense<0.000000e+00> : vector<2x128xf32>
    %465 = tpu.matmul %463, %464, %cst_78 {dimension_numbers = #tpu.dot_dimension_numbers<[1], [0], [0], [1], [0, 0, 1, 1], [], []>} : vector<2x32xf32>, vector<32x128xf32>, vector<2x128xf32> -> vector<2x128xf32>
    %466 = arith.addf %455, %465 : vector<2x128xf32>
    %467 = vector.extract_strided_slice %466 {offsets = [0, 0], sizes = [2, 32], strides = [1, 1]} : vector<2x128xf32> to vector<2x32xf32>
    %468 = arith.negf %467 : vector<2x32xf32>
    %469 = math.exp %468 : vector<2x32xf32>
    %cst_79 = arith.constant 1.000000e+00 : f32
    %470 = vector.broadcast %cst_79 : f32 to vector<2x32xf32>
    %471 = arith.addf %470, %469 : vector<2x32xf32>
    %472 = arith.divf %470, %471 : vector<2x32xf32>
    %473 = vector.extract_strided_slice %466 {offsets = [0, 32], sizes = [2, 32], strides = [1, 1]} : vector<2x128xf32> to vector<2x32xf32>
    %474 = arith.negf %473 : vector<2x32xf32>
    %475 = math.exp %474 : vector<2x32xf32>
    %cst_80 = arith.constant 1.000000e+00 : f32
    %476 = vector.broadcast %cst_80 : f32 to vector<2x32xf32>
    %477 = arith.addf %476, %475 : vector<2x32xf32>
    %478 = arith.divf %476, %477 : vector<2x32xf32>
    %479 = vector.extract_strided_slice %466 {offsets = [0, 64], sizes = [2, 32], strides = [1, 1]} : vector<2x128xf32> to vector<2x32xf32>
    %480 = math.tanh %479 : vector<2x32xf32>
    %481 = vector.extract_strided_slice %466 {offsets = [0, 96], sizes = [2, 32], strides = [1, 1]} : vector<2x128xf32> to vector<2x32xf32>
    %482 = arith.negf %481 : vector<2x32xf32>
    %483 = math.exp %482 : vector<2x32xf32>
    %cst_81 = arith.constant 1.000000e+00 : f32
    %484 = vector.broadcast %cst_81 : f32 to vector<2x32xf32>
    %485 = arith.addf %484, %483 : vector<2x32xf32>
    %486 = arith.divf %484, %485 : vector<2x32xf32>
    %487 = arith.mulf %478, %463 : vector<2x32xf32>
    %488 = arith.mulf %472, %480 : vector<2x32xf32>
    %489 = arith.addf %487, %488 : vector<2x32xf32>
    %490 = math.tanh %489 : vector<2x32xf32>
    %491 = arith.mulf %486, %490 : vector<2x32xf32>
    %cst_82 = arith.constant dense<0.000000e+00> : vector<2x128xf32>
    %492 = tpu.matmul %491, %464, %cst_82 {dimension_numbers = #tpu.dot_dimension_numbers<[1], [0], [0], [1], [0, 0, 1, 1], [], []>} : vector<2x32xf32>, vector<32x128xf32>, vector<2x128xf32> -> vector<2x128xf32>
    %493 = arith.addf %456, %492 : vector<2x128xf32>
    %494 = vector.extract_strided_slice %493 {offsets = [0, 0], sizes = [2, 32], strides = [1, 1]} : vector<2x128xf32> to vector<2x32xf32>
    %495 = arith.negf %494 : vector<2x32xf32>
    %496 = math.exp %495 : vector<2x32xf32>
    %cst_83 = arith.constant 1.000000e+00 : f32
    %497 = vector.broadcast %cst_83 : f32 to vector<2x32xf32>
    %498 = arith.addf %497, %496 : vector<2x32xf32>
    %499 = arith.divf %497, %498 : vector<2x32xf32>
    %500 = vector.extract_strided_slice %493 {offsets = [0, 32], sizes = [2, 32], strides = [1, 1]} : vector<2x128xf32> to vector<2x32xf32>
    %501 = arith.negf %500 : vector<2x32xf32>
    %502 = math.exp %501 : vector<2x32xf32>
    %cst_84 = arith.constant 1.000000e+00 : f32
    %503 = vector.broadcast %cst_84 : f32 to vector<2x32xf32>
    %504 = arith.addf %503, %502 : vector<2x32xf32>
    %505 = arith.divf %503, %504 : vector<2x32xf32>
    %506 = vector.extract_strided_slice %493 {offsets = [0, 64], sizes = [2, 32], strides = [1, 1]} : vector<2x128xf32> to vector<2x32xf32>
    %507 = math.tanh %506 : vector<2x32xf32>
    %508 = vector.extract_strided_slice %493 {offsets = [0, 96], sizes = [2, 32], strides = [1, 1]} : vector<2x128xf32> to vector<2x32xf32>
    %509 = arith.negf %508 : vector<2x32xf32>
    %510 = math.exp %509 : vector<2x32xf32>
    %cst_85 = arith.constant 1.000000e+00 : f32
    %511 = vector.broadcast %cst_85 : f32 to vector<2x32xf32>
    %512 = arith.addf %511, %510 : vector<2x32xf32>
    %513 = arith.divf %511, %512 : vector<2x32xf32>
    %514 = arith.mulf %505, %489 : vector<2x32xf32>
    %515 = arith.mulf %499, %507 : vector<2x32xf32>
    %516 = arith.addf %514, %515 : vector<2x32xf32>
    %517 = math.tanh %516 : vector<2x32xf32>
    %518 = arith.mulf %513, %517 : vector<2x32xf32>
    %cst_86 = arith.constant dense<0.000000e+00> : vector<2x128xf32>
    %519 = tpu.matmul %518, %464, %cst_86 {dimension_numbers = #tpu.dot_dimension_numbers<[1], [0], [0], [1], [0, 0, 1, 1], [], []>} : vector<2x32xf32>, vector<32x128xf32>, vector<2x128xf32> -> vector<2x128xf32>
    %520 = arith.addf %457, %519 : vector<2x128xf32>
    %521 = vector.extract_strided_slice %520 {offsets = [0, 0], sizes = [2, 32], strides = [1, 1]} : vector<2x128xf32> to vector<2x32xf32>
    %522 = arith.negf %521 : vector<2x32xf32>
    %523 = math.exp %522 : vector<2x32xf32>
    %cst_87 = arith.constant 1.000000e+00 : f32
    %524 = vector.broadcast %cst_87 : f32 to vector<2x32xf32>
    %525 = arith.addf %524, %523 : vector<2x32xf32>
    %526 = arith.divf %524, %525 : vector<2x32xf32>
    %527 = vector.extract_strided_slice %520 {offsets = [0, 32], sizes = [2, 32], strides = [1, 1]} : vector<2x128xf32> to vector<2x32xf32>
    %528 = arith.negf %527 : vector<2x32xf32>
    %529 = math.exp %528 : vector<2x32xf32>
    %cst_88 = arith.constant 1.000000e+00 : f32
    %530 = vector.broadcast %cst_88 : f32 to vector<2x32xf32>
    %531 = arith.addf %530, %529 : vector<2x32xf32>
    %532 = arith.divf %530, %531 : vector<2x32xf32>
    %533 = vector.extract_strided_slice %520 {offsets = [0, 64], sizes = [2, 32], strides = [1, 1]} : vector<2x128xf32> to vector<2x32xf32>
    %534 = math.tanh %533 : vector<2x32xf32>
    %535 = vector.extract_strided_slice %520 {offsets = [0, 96], sizes = [2, 32], strides = [1, 1]} : vector<2x128xf32> to vector<2x32xf32>
    %536 = arith.negf %535 : vector<2x32xf32>
    %537 = math.exp %536 : vector<2x32xf32>
    %cst_89 = arith.constant 1.000000e+00 : f32
    %538 = vector.broadcast %cst_89 : f32 to vector<2x32xf32>
    %539 = arith.addf %538, %537 : vector<2x32xf32>
    %540 = arith.divf %538, %539 : vector<2x32xf32>
    %541 = arith.mulf %532, %516 : vector<2x32xf32>
    %542 = arith.mulf %526, %534 : vector<2x32xf32>
    %543 = arith.addf %541, %542 : vector<2x32xf32>
    %544 = math.tanh %543 : vector<2x32xf32>
    %545 = arith.mulf %540, %544 : vector<2x32xf32>
    %cst_90 = arith.constant dense<0.000000e+00> : vector<2x128xf32>
    %546 = tpu.matmul %545, %464, %cst_90 {dimension_numbers = #tpu.dot_dimension_numbers<[1], [0], [0], [1], [0, 0, 1, 1], [], []>} : vector<2x32xf32>, vector<32x128xf32>, vector<2x128xf32> -> vector<2x128xf32>
    %547 = arith.addf %458, %546 : vector<2x128xf32>
    %548 = vector.extract_strided_slice %547 {offsets = [0, 0], sizes = [2, 32], strides = [1, 1]} : vector<2x128xf32> to vector<2x32xf32>
    %549 = arith.negf %548 : vector<2x32xf32>
    %550 = math.exp %549 : vector<2x32xf32>
    %cst_91 = arith.constant 1.000000e+00 : f32
    %551 = vector.broadcast %cst_91 : f32 to vector<2x32xf32>
    %552 = arith.addf %551, %550 : vector<2x32xf32>
    %553 = arith.divf %551, %552 : vector<2x32xf32>
    %554 = vector.extract_strided_slice %547 {offsets = [0, 32], sizes = [2, 32], strides = [1, 1]} : vector<2x128xf32> to vector<2x32xf32>
    %555 = arith.negf %554 : vector<2x32xf32>
    %556 = math.exp %555 : vector<2x32xf32>
    %cst_92 = arith.constant 1.000000e+00 : f32
    %557 = vector.broadcast %cst_92 : f32 to vector<2x32xf32>
    %558 = arith.addf %557, %556 : vector<2x32xf32>
    %559 = arith.divf %557, %558 : vector<2x32xf32>
    %560 = vector.extract_strided_slice %547 {offsets = [0, 64], sizes = [2, 32], strides = [1, 1]} : vector<2x128xf32> to vector<2x32xf32>
    %561 = math.tanh %560 : vector<2x32xf32>
    %562 = vector.extract_strided_slice %547 {offsets = [0, 96], sizes = [2, 32], strides = [1, 1]} : vector<2x128xf32> to vector<2x32xf32>
    %563 = arith.negf %562 : vector<2x32xf32>
    %564 = math.exp %563 : vector<2x32xf32>
    %cst_93 = arith.constant 1.000000e+00 : f32
    %565 = vector.broadcast %cst_93 : f32 to vector<2x32xf32>
    %566 = arith.addf %565, %564 : vector<2x32xf32>
    %567 = arith.divf %565, %566 : vector<2x32xf32>
    %568 = arith.mulf %559, %543 : vector<2x32xf32>
    %569 = arith.mulf %553, %561 : vector<2x32xf32>
    %570 = arith.addf %568, %569 : vector<2x32xf32>
    %571 = math.tanh %570 : vector<2x32xf32>
    %572 = arith.mulf %567, %571 : vector<2x32xf32>
    %cst_94 = arith.constant dense<0.000000e+00> : vector<2x128xf32>
    %573 = tpu.matmul %572, %464, %cst_94 {dimension_numbers = #tpu.dot_dimension_numbers<[1], [0], [0], [1], [0, 0, 1, 1], [], []>} : vector<2x32xf32>, vector<32x128xf32>, vector<2x128xf32> -> vector<2x128xf32>
    %574 = arith.addf %459, %573 : vector<2x128xf32>
    %575 = vector.extract_strided_slice %574 {offsets = [0, 0], sizes = [2, 32], strides = [1, 1]} : vector<2x128xf32> to vector<2x32xf32>
    %576 = arith.negf %575 : vector<2x32xf32>
    %577 = math.exp %576 : vector<2x32xf32>
    %cst_95 = arith.constant 1.000000e+00 : f32
    %578 = vector.broadcast %cst_95 : f32 to vector<2x32xf32>
    %579 = arith.addf %578, %577 : vector<2x32xf32>
    %580 = arith.divf %578, %579 : vector<2x32xf32>
    %581 = vector.extract_strided_slice %574 {offsets = [0, 32], sizes = [2, 32], strides = [1, 1]} : vector<2x128xf32> to vector<2x32xf32>
    %582 = arith.negf %581 : vector<2x32xf32>
    %583 = math.exp %582 : vector<2x32xf32>
    %cst_96 = arith.constant 1.000000e+00 : f32
    %584 = vector.broadcast %cst_96 : f32 to vector<2x32xf32>
    %585 = arith.addf %584, %583 : vector<2x32xf32>
    %586 = arith.divf %584, %585 : vector<2x32xf32>
    %587 = vector.extract_strided_slice %574 {offsets = [0, 64], sizes = [2, 32], strides = [1, 1]} : vector<2x128xf32> to vector<2x32xf32>
    %588 = math.tanh %587 : vector<2x32xf32>
    %589 = vector.extract_strided_slice %574 {offsets = [0, 96], sizes = [2, 32], strides = [1, 1]} : vector<2x128xf32> to vector<2x32xf32>
    %590 = arith.negf %589 : vector<2x32xf32>
    %591 = math.exp %590 : vector<2x32xf32>
    %cst_97 = arith.constant 1.000000e+00 : f32
    %592 = vector.broadcast %cst_97 : f32 to vector<2x32xf32>
    %593 = arith.addf %592, %591 : vector<2x32xf32>
    %594 = arith.divf %592, %593 : vector<2x32xf32>
    %595 = arith.mulf %586, %570 : vector<2x32xf32>
    %596 = arith.mulf %580, %588 : vector<2x32xf32>
    %597 = arith.addf %595, %596 : vector<2x32xf32>
    %598 = math.tanh %597 : vector<2x32xf32>
    %599 = arith.mulf %594, %598 : vector<2x32xf32>
    %cst_98 = arith.constant dense<0.000000e+00> : vector<2x128xf32>
    %600 = tpu.matmul %599, %464, %cst_98 {dimension_numbers = #tpu.dot_dimension_numbers<[1], [0], [0], [1], [0, 0, 1, 1], [], []>} : vector<2x32xf32>, vector<32x128xf32>, vector<2x128xf32> -> vector<2x128xf32>
    %601 = arith.addf %460, %600 : vector<2x128xf32>
    %602 = vector.extract_strided_slice %601 {offsets = [0, 0], sizes = [2, 32], strides = [1, 1]} : vector<2x128xf32> to vector<2x32xf32>
    %603 = arith.negf %602 : vector<2x32xf32>
    %604 = math.exp %603 : vector<2x32xf32>
    %cst_99 = arith.constant 1.000000e+00 : f32
    %605 = vector.broadcast %cst_99 : f32 to vector<2x32xf32>
    %606 = arith.addf %605, %604 : vector<2x32xf32>
    %607 = arith.divf %605, %606 : vector<2x32xf32>
    %608 = vector.extract_strided_slice %601 {offsets = [0, 32], sizes = [2, 32], strides = [1, 1]} : vector<2x128xf32> to vector<2x32xf32>
    %609 = arith.negf %608 : vector<2x32xf32>
    %610 = math.exp %609 : vector<2x32xf32>
    %cst_100 = arith.constant 1.000000e+00 : f32
    %611 = vector.broadcast %cst_100 : f32 to vector<2x32xf32>
    %612 = arith.addf %611, %610 : vector<2x32xf32>
    %613 = arith.divf %611, %612 : vector<2x32xf32>
    %614 = vector.extract_strided_slice %601 {offsets = [0, 64], sizes = [2, 32], strides = [1, 1]} : vector<2x128xf32> to vector<2x32xf32>
    %615 = math.tanh %614 : vector<2x32xf32>
    %616 = vector.extract_strided_slice %601 {offsets = [0, 96], sizes = [2, 32], strides = [1, 1]} : vector<2x128xf32> to vector<2x32xf32>
    %617 = arith.negf %616 : vector<2x32xf32>
    %618 = math.exp %617 : vector<2x32xf32>
    %cst_101 = arith.constant 1.000000e+00 : f32
    %619 = vector.broadcast %cst_101 : f32 to vector<2x32xf32>
    %620 = arith.addf %619, %618 : vector<2x32xf32>
    %621 = arith.divf %619, %620 : vector<2x32xf32>
    %622 = arith.mulf %613, %597 : vector<2x32xf32>
    %623 = arith.mulf %607, %615 : vector<2x32xf32>
    %624 = arith.addf %622, %623 : vector<2x32xf32>
    %625 = math.tanh %624 : vector<2x32xf32>
    %626 = arith.mulf %621, %625 : vector<2x32xf32>
    %cst_102 = arith.constant dense<0.000000e+00> : vector<2x128xf32>
    %627 = tpu.matmul %626, %464, %cst_102 {dimension_numbers = #tpu.dot_dimension_numbers<[1], [0], [0], [1], [0, 0, 1, 1], [], []>} : vector<2x32xf32>, vector<32x128xf32>, vector<2x128xf32> -> vector<2x128xf32>
    %628 = arith.addf %461, %627 : vector<2x128xf32>
    %629 = vector.extract_strided_slice %628 {offsets = [0, 0], sizes = [2, 32], strides = [1, 1]} : vector<2x128xf32> to vector<2x32xf32>
    %630 = arith.negf %629 : vector<2x32xf32>
    %631 = math.exp %630 : vector<2x32xf32>
    %cst_103 = arith.constant 1.000000e+00 : f32
    %632 = vector.broadcast %cst_103 : f32 to vector<2x32xf32>
    %633 = arith.addf %632, %631 : vector<2x32xf32>
    %634 = arith.divf %632, %633 : vector<2x32xf32>
    %635 = vector.extract_strided_slice %628 {offsets = [0, 32], sizes = [2, 32], strides = [1, 1]} : vector<2x128xf32> to vector<2x32xf32>
    %636 = arith.negf %635 : vector<2x32xf32>
    %637 = math.exp %636 : vector<2x32xf32>
    %cst_104 = arith.constant 1.000000e+00 : f32
    %638 = vector.broadcast %cst_104 : f32 to vector<2x32xf32>
    %639 = arith.addf %638, %637 : vector<2x32xf32>
    %640 = arith.divf %638, %639 : vector<2x32xf32>
    %641 = vector.extract_strided_slice %628 {offsets = [0, 64], sizes = [2, 32], strides = [1, 1]} : vector<2x128xf32> to vector<2x32xf32>
    %642 = math.tanh %641 : vector<2x32xf32>
    %643 = vector.extract_strided_slice %628 {offsets = [0, 96], sizes = [2, 32], strides = [1, 1]} : vector<2x128xf32> to vector<2x32xf32>
    %644 = arith.negf %643 : vector<2x32xf32>
    %645 = math.exp %644 : vector<2x32xf32>
    %cst_105 = arith.constant 1.000000e+00 : f32
    %646 = vector.broadcast %cst_105 : f32 to vector<2x32xf32>
    %647 = arith.addf %646, %645 : vector<2x32xf32>
    %648 = arith.divf %646, %647 : vector<2x32xf32>
    %649 = arith.mulf %640, %624 : vector<2x32xf32>
    %650 = arith.mulf %634, %642 : vector<2x32xf32>
    %651 = arith.addf %649, %650 : vector<2x32xf32>
    %652 = math.tanh %651 : vector<2x32xf32>
    %653 = arith.mulf %648, %652 : vector<2x32xf32>
    %654 = vector.extract_strided_slice %462 {offsets = [0, 0], sizes = [2, 32], strides = [1, 1]} : vector<2x128xf32> to vector<2x32xf32>
    %655 = arith.negf %654 : vector<2x32xf32>
    %656 = math.exp %655 : vector<2x32xf32>
    %cst_106 = arith.constant 1.000000e+00 : f32
    %657 = vector.broadcast %cst_106 : f32 to vector<2x32xf32>
    %658 = arith.addf %657, %656 : vector<2x32xf32>
    %659 = arith.divf %657, %658 : vector<2x32xf32>
    %660 = vector.extract_strided_slice %462 {offsets = [0, 32], sizes = [2, 32], strides = [1, 1]} : vector<2x128xf32> to vector<2x32xf32>
    %661 = arith.negf %660 : vector<2x32xf32>
    %662 = math.exp %661 : vector<2x32xf32>
    %cst_107 = arith.constant 1.000000e+00 : f32
    %663 = vector.broadcast %cst_107 : f32 to vector<2x32xf32>
    %664 = arith.addf %663, %662 : vector<2x32xf32>
    %665 = arith.divf %663, %664 : vector<2x32xf32>
    %666 = vector.extract_strided_slice %462 {offsets = [0, 64], sizes = [2, 32], strides = [1, 1]} : vector<2x128xf32> to vector<2x32xf32>
    %667 = math.tanh %666 : vector<2x32xf32>
    %668 = vector.extract_strided_slice %462 {offsets = [0, 96], sizes = [2, 32], strides = [1, 1]} : vector<2x128xf32> to vector<2x32xf32>
    %669 = arith.negf %668 : vector<2x32xf32>
    %670 = math.exp %669 : vector<2x32xf32>
    %cst_108 = arith.constant 1.000000e+00 : f32
    %671 = vector.broadcast %cst_108 : f32 to vector<2x32xf32>
    %672 = arith.addf %671, %670 : vector<2x32xf32>
    %673 = arith.divf %671, %672 : vector<2x32xf32>
    %674 = arith.mulf %665, %463 : vector<2x32xf32>
    %675 = arith.mulf %659, %667 : vector<2x32xf32>
    %676 = arith.addf %674, %675 : vector<2x32xf32>
    %677 = math.tanh %676 : vector<2x32xf32>
    %678 = arith.mulf %673, %677 : vector<2x32xf32>
    %679 = tpu.concatenate %653, %678 in 1 : vector<2x32xf32>, vector<2x32xf32> -> vector<2x64xf32>
    %c0_109 = arith.constant 0 : index
    %c0_110 = arith.constant 0 : index
    %680 = vector.load %arg7[%c0_109, %c0_110] : memref<64x4xf32, #tpu.memory_space<vmem>>, vector<64x4xf32>
    %cst_111 = arith.constant dense<0.000000e+00> : vector<2x4xf32>
    %681 = tpu.matmul %679, %680, %cst_111 {dimension_numbers = #tpu.dot_dimension_numbers<[1], [0], [0], [1], [0, 0, 1, 1], [], []>} : vector<2x64xf32>, vector<64x4xf32>, vector<2x4xf32> -> vector<2x4xf32>
    %c0_112 = arith.constant 0 : index
    %c0_113 = arith.constant 0 : index
    %682 = vector.load %arg8[%c0_112, %c0_113] : memref<1x4xf32, #tpu.memory_space<vmem>>, vector<1x4xf32>
    %683 = vector.broadcast %682 : vector<1x4xf32> to vector<2x4xf32>
    %684 = arith.addf %681, %683 : vector<2x4xf32>
    %c0_114 = arith.constant 0 : index
    %c0_115 = arith.constant 0 : index
    %685 = vector.load %arg9[%c0_114, %c0_115] : memref<2x4xf32, #tpu.memory_space<vmem>>, vector<2x4xf32>
    tpu.vector_store %arg9[%c0_114, %c0_115], %684 {strides = array<i32>} : memref<2x4xf32, #tpu.memory_space<vmem>>, vector<2x4xf32>,
    return
  }
}

</mosaic_0001>

<bundles_post_ra>
// kernel: glove_forward.1
= control target key start
LH: loop header
LB: loop body
LE: loop exit
PB: predicated region body
PF: predicated region fallthrough
CT: control target
= control target key end

     0   :  { %14 = vsyncpa [#allocation3], 0  ;;  %s4537_s0 = inlined_call_operand.vmem [shape: f32[14,16], index: 0, kind: input, shape index: {}]   ;;  %s4538_s1 = inlined_call_operand.vmem [shape: f32[16,256], index: 1, kind: input, shape index: {}]   ;;  %s4539_s2 = inlined_call_operand.vmem [shape: f32[1,256], index: 2, kind: input, shape index: {}]   ;;  %s4540_s3 = inlined_call_operand.vmem [shape: f32[64,256], index: 3, kind: input, shape index: {}]   ;;  %s4541_s4 = inlined_call_operand.hbm [shape: f32[64,256], index: 4, kind: input, shape index: {}]   ;;  %s4542_s5 = inlined_call_operand.vmem [shape: f32[1,256], index: 5, kind: input, shape index: {}]   ;;  %s4543_s6 = inlined_call_operand.hbm [shape: f32[32,128], index: 6, kind: input, shape index: {}]   ;;  %s4544_s7 = inlined_call_operand.vmem [shape: f32[64,4], index: 7, kind: input, shape index: {}]   ;;  %s4545_s8 = inlined_call_operand.vmem [shape: f32[1,4], index: 8, kind: input, shape index: {}]   ;;  %s4546_s9 = inlined_call_operand.hbm [shape: f32[2,4], index: 9, kind: output, shape index: {}]  }
   0x1   :  { %15 = vsyncpa [#allocation6], 0 }
   0x2   :  { %16 = vsyncpa [#allocation4], 0  ;;  %s3862_s30 = smov [#allocation2]   ;;  %s3790_s13 = scalar_lea.hbm %s4541_s4, 2048 }
   0x3   :  { %s30_s10 = sshll.u32 %s3862_s30, 4  ;;  %p3791_p0 = scmp.ne.s32.totalorder %s4541_s4, %s3790_s13  ;;  %s31_s10 = int_to_ptr.vmem [resolvable:$true] %s30_s10 }
   0x4   :  { %p3794_p1 = scmp.lt.u32.totalorder %s3790_s13, %s4541_s4 }
   0x6   :  { %p3796_p2 = pnand %p3794_p1, %p3791_p0 }
   0x8   :  { %3799 = shalt.err (!%p3796_p2)
}
   0x9   :  { %s3800_s18 = scalar_lea.vmem %s31_s10, 2048  ;;  %p3805_p4 = scmp.lt.s32.totalorder %s31_s10, %s31_s10 }
   0xa   :  { %p3801_p3 = scmp.ne.s32.totalorder %s31_s10, %s3800_s18  ;;  %p3806_p5 = scmp.lt.s32.totalorder %s3800_s18, %s3800_s18 }
   0xc   :  { %p3807_p6 = por %p3806_p5, %p3805_p4 }
   0xe   :  { %p3808_p7 = pnand %p3807_p6, %p3801_p3 }
  0x10   :  { %3811 = shalt.err (!%p3808_p7)
}
  0x11   :  { %s3863_s19 = smov 256   ;;  %s3864_s20 = smov 16  }
  0x12   :  { %36 = dma.hbm_to_vmem [thread:$0]  %s4541_s4, 2048, %s31_s10, [#allocation3], %s3863_s19, %s3863_s19, %s3864_s20  }
  0x13   :  { %s3865_s23 = smov [#allocation5]   ;;  %s3812_s27 = scalar_lea.hbm %s4543_s6, 512 }
  0x14   :  { %s44_s24 = sshll.u32 %s3865_s23, 4  ;;  %p3813_p8 = scmp.ne.s32.totalorder %s4543_s6, %s3812_s27  ;;  %s45_s24 = int_to_ptr.vmem [resolvable:$true] %s44_s24 }
  0x15   :  { %p3816_p9 = scmp.lt.u32.totalorder %s3812_s27, %s4543_s6 }
  0x17   :  { %p3818_p10 = pnand %p3816_p9, %p3813_p8 }
  0x19   :  { %3821 = shalt.err (!%p3818_p10)
}
  0x1a   :  { %s3822_s12 = scalar_lea.vmem %s45_s24, 512  ;;  %p3827_p12 = scmp.lt.s32.totalorder %s45_s24, %s45_s24 }
  0x1b   :  { %p3823_p11 = scmp.ne.s32.totalorder %s45_s24, %s3822_s12  ;;  %p3828_p13 = scmp.lt.s32.totalorder %s3822_s12, %s3822_s12 }
  0x1d   :  { %p3829_p0 = por %p3828_p13, %p3827_p12 }
  0x1f   :  { %p3830_p1 = pnand %p3829_p0, %p3823_p11 }
  0x21   :  { %3833 = shalt.err (!%p3830_p1)
}
  0x22   :  { %s3866_s4 = smov 128   ;;  %s3867_s10 = smov 8  }
  0x23   :  { %50 = dma.hbm_to_vmem [thread:$0]  %s4543_s6, 512, %s45_s24, [#allocation6], %s3866_s4, %s3866_s4, %s3867_s10  }
  0x24   :  { %3856 = dma.done.wait [#allocation3], 2048  }
  0x25   :  { %3857 = vsyncadd [#allocation3], 4294965248 }
  0x26   :  { %3858 = dma.done.wait [#allocation6], 512  }
  0x27   :  { %3859 = vsyncadd [#allocation6], 4294966784  ;;  %v3868_v0 = vmov 0.0   ;;  %v62_v1 = vld [vmem:[%s4538_s1 + $0x8] sm:$0xff]  ;;  %v64_v2 = vld [vmem:[%s4538_s1 + $0x18] sm:$0xff]  ;;  %vm79_vm0 = vcmask 130048   ;;  %v69_v33 = vlaneseq }
  0x28   :  { %150 = vmatprep.mubr.f32.mxu1 %v3868_v0  ;;  %385 = vmatprep.mubr.f32.mxu0 %v3868_v0  ;;  %v61_v3 = vld [vmem:[%s4538_s1] sm:$0xff]  ;;  %v3288_v4 = vpack.c.bf16 %v64_v2, %v62_v1  ;;  %v63_v5 = vld [vmem:[%s4538_s1 + $0x10] sm:$0xff]  ;;  %v164_v6 = vld [vmem:[%s4540_s3 + $0x8] sm:$0xff]  ;;  %s3870_s4 = smov 32   ;;  %vm316_vm1 = vcmask 261120   ;;  %vm179_vm2 = vcmask 523264  }
  0x29   :  { %v3290_v7 = vpack.c.bf16 %v63_v5, %v61_v3  ;;  %v166_v8 = vld [vmem:[%s4540_s3 + $0x18] sm:$0xff]  ;;  %v163_v9 = vld [vmem:[%s4540_s3] sm:$0xff]  ;;  %v165_v10 = vld [vmem:[%s4540_s3 + $0x10] sm:$0xff]  ;;  %v4064_v34 = vshrl.u32 %v69_v33, 7  ;;  %vm3872_vm3 = vmmov 0   ;;  %s3873_s29 = smov [#allocation7]  }
  0x2a   :  { %3289 = vmatprep.subr.bf16.mxu1 %v3288_v4  ;;  %v3974_v11 = vpack.c.bf16 %v166_v8, %v164_v6  ;;  %v168_v12 = vld [vmem:[%s4540_s3 + $0x28] sm:$0xff]  ;;  %v170_v13 = vld [vmem:[%s4540_s3 + $0x38] sm:$0xff]  ;;  %v65_v14 = vld [vmem:[%s4537_s0] sm:$0xff]  ;;  %v3985_v15 = vpack.c.bf16 %v165_v10, %v163_v9  ;;  %vm3078_vm4 = vcmask 25600  }
  0x2b   :  { %3291 = vmatpush1.bf16.msra.mxu1 %v3290_v7  ;;  %v3988_v16 = vpack.c.bf16 %v170_v13, %v168_v12  ;;  %v167_v17 = vld [vmem:[%s4540_s3 + $0x20] sm:$0xff]  ;;  %v169_v18 = vld [vmem:[%s4540_s3 + $0x30] sm:$0xff]  ;;  %v172_v19 = vld [vmem:[%s4540_s3 + $0x48] sm:$0xff]  ;;  %v75_v35 = vsub.s32 1, %v4064_v34  ;;  %v71_v38 = vsub.s32 0, %v4064_v34 }
  0x2c   :  { %3293 = vmatprep.subr.bf16.mxu1 %v3974_v11  ;;  %3309 = vmatprep.subr.bf16.mxu0 %v3974_v11  ;;  %v174_v20 = vld [vmem:[%s4540_s3 + $0x58] sm:$0xff]  ;;  %v4007_v21 = vpack.c.bf16 %v169_v18, %v167_v17  ;;  %v66_v22 = vld [vmem:[%s4537_s0 + $0x8] sm:$0x3f]  ;;  %v171_v24 = vld [vmem:[%s4540_s3 + $0x40] sm:$0xff]  ;;  %s3086_s0 = sshll.u32 %s3873_s29, 4  ;;  %s3087_s0 = int_to_ptr.vmem [resolvable:$true] %s3086_s0 }
  0x2d   :  { %3311 = vmatpush1.bf16.msra.mxu0 %v3985_v15  ;;  %v4014_v23 = vpack.c.bf16 %v174_v20, %v172_v19  ;;  %v173_v25 = vld [vmem:[%s4540_s3 + $0x50] sm:$0xff]  ;;  %v176_v26 = vld [vmem:[%s4540_s3 + $0x68] sm:$0xff]  ;;  %v178_v27 = vld [vmem:[%s4540_s3 + $0x78] sm:$0xff]  ;;  %s3834_s1 = scalar_lea.vmem %s3087_s0, 32  ;;  %p3839_p3 = scmp.lt.s32.totalorder %s3087_s0, %s3087_s0 }
  0x2e   :  { %3096 = vmatmul.mubr.msk.f32.vlgmr.msra.gmra.mrb[0].mxu1 %vm79_vm0, %v65_v14  ;;  %3313 = vmatprep.subr.bf16.mxu0 %v3988_v16  ;;  %v4032_v28 = vpack.c.bf16 %v173_v25, %v171_v24  ;;  %v4036_v29 = vpack.c.bf16 %v178_v27, %v176_v26  ;;  %v175_v30 = vld [vmem:[%s4540_s3 + $0x60] sm:$0xff]  ;;  %v177_v31 = vld [vmem:[%s4540_s3 + $0x70] sm:$0xff]  ;;  %p3835_p2 = scmp.ne.s32.totalorder %s3087_s0, %s3834_s1  ;;  %p3840_p4 = scmp.lt.s32.totalorder %s3834_s1, %s3834_s1 }
  0x2f   :  { %3295 = vmatpush1.bf16.msra.mxu1 %v3985_v15  ;;  %156 = vmatprep.mubr.f32.mxu1 %v3868_v0  ;;  %v4047_v32 = vpack.c.bf16 %v177_v31, %v175_v30  ;;  %v67_v36 = vld [vmem:[%s4539_s2] sm:$0x3]  ;;  %s3869_s2 = smov 64  }
  0x30   :  { %3297 = vmatprep.subr.bf16.mxu1 %v3988_v16  ;;  %v76_v37 = vrot.slane %v67_v36, %v75_v35  ;;  %v72_v42 = vrot.slane %v67_v36, %v71_v38  ;;  %p3841_p5 = por %p3840_p4, %p3839_p3 }
  0x31   :  { %3315 = vmatpush1.bf16.msra.mxu0 %v4007_v21 }
  0x32   :  { %3097 = vmatmul.mubr.msk.f32.gmra.mrb[2].mxu1 %vm79_vm0, %v66_v22  ;;  %3317 = vmatprep.subr.bf16.mxu0 %v4014_v23  ;;  %p3842_p6 = pnand %p3841_p5, %p3835_p2 }
  0x33   :  { %3299 = vmatpush1.bf16.msra.mxu1 %v4007_v21  ;;  %247 = vmatprep.mubr.f32.mxu1 %v3868_v0 }
  0x34   :  { %3301 = vmatprep.subr.bf16.mxu1 %v4014_v23 }
  0x35   :  { %3319 = vmatpush1.bf16.msra.mxu0 %v4032_v28 }
  0x36   :  { %3321 = vmatprep.subr.bf16.mxu0 %v4036_v29 }
  0x37   :  { %3303 = vmatpush1.bf16.msra.mxu1 %v4032_v28 }
  0x38   :  { %3305 = vmatprep.subr.bf16.mxu1 %v4036_v29 }
  0x39   :  { %3323 = vmatpush1.bf16.msra.mxu0 %v4047_v32 }
  0x3a   :  { %3341 = vmatprep.subr.bf16.mxu0 %v3974_v11 }
  0x3b   :  { %3307 = vmatpush1.bf16.msra.mxu1 %v4047_v32 }
  0x3c   :  { %3325 = vmatprep.subr.bf16.mxu1 %v3974_v11 }
  0x3e   :  { %248 = vmatmul.mubr.f32.vlgmr.msra.gmra.mrb[4].mxu1 %v3868_v0 }
  0x3f   :  { %3327 = vmatpush1.bf16.msra.mxu1 %v3985_v15  ;;  %531 = vmatprep.mubr.f32.mxu1 %v3868_v0 }
  0x40   :  { %3329 = vmatprep.subr.bf16.mxu1 %v3988_v16 }
  0x43   :  { %3331 = vmatpush1.bf16.msra.mxu1 %v4007_v21 }
  0x44   :  { %3333 = vmatprep.subr.bf16.mxu1 %v4014_v23 }
  0x47   :  { %3335 = vmatpush1.bf16.msra.mxu1 %v4032_v28 }
  0x48   :  { %3337 = vmatprep.subr.bf16.mxu1 %v4036_v29 }
  0x4b   :  { %3339 = vmatpush1.bf16.msra.mxu1 %v4047_v32 }
  0x4c   :  { %3357 = vmatprep.subr.bf16.mxu1 %v3974_v11 }
 0x101   :  { %v152_v39 = vpop.f32.mrb[0].mxu1 }
 0x102   :  { %v154_v40 = vpop.f32.mrb[1].mxu1  ;;  %v4081_v50 = vadd.f32 %v152_v39, %v72_v42 }
 0x103   :  { %v4073_v41 = vadd.f32 %v154_v40, %v76_v37 }
 0x105   :  { %v158_v43 = vpop.f32.mrb[2].mxu1 }
 0x106   :  { %v4077_v44 = vadd.f32 %v158_v43, %v72_v42  ;;  %v160_v45 = vpop.f32.mrb[3].mxu1 }
 0x107   :  { %v4079_v48 = vadd.f32 %v160_v45, %v76_v37 }
 0x111   :  { %v249_v46 = vpop.f32.mrb[4].mxu1 }
 0x112   :  { %v251_v47 = vpop.f32.mrb[5].mxu1  ;;  %v254_v52 = vadd.f32 %v249_v46, %v4081_v50 }
 0x113   :  { %v280_v49 = vrot.slane %v251_v47, 4 }
 0x114   :  { %v3098_v56 = vmul.f32 -1.442695, %v254_v52 }
 0x115   :  { %v282_v51 = vadd.f32 %v280_v49, %v4079_v48 }
 0x117   :  { %3614 = vtanh.f32 %v282_v51  ;;  %v3099_v55 = vmul.f32 -1.442695, %v282_v51 }
 0x118   :  { %3616 = vtanh.f32 %v254_v52 }
 0x119   :  { %3618 = vpow2.f32 %v3099_v55 }
 0x11a   :  { %3620 = vpow2.f32 %v3098_v56 }
 0x121   :  { %v3615_v53 = vpop.eup %3614 }
 0x122   :  { %292 = vrot.lane.b32.xlu0 %v3615_v53, %s3869_s2  ;;  %v3617_v54 = vpop.eup %3616 }
 0x123   :  { %v3619_v57 = vpop.eup %3618 }
 0x124   :  { %v286_v58 = vadd.f32 1.0, %v3619_v57  ;;  %v3621_v59 = vpop.eup %3620 }
 0x125   :  { %v258_v60 = vadd.f32 1.0, %v3621_v59 }
 0x126   :  { %264 = vrot.lane.b32.xlu0 %v3617_v54, %s3869_s2  ;;  %3622 = vrcp.f32 %v286_v58 }
 0x127   :  { %3624 = vrcp.f32 %v258_v60 }
 0x130   :  { %v3623_v61 = vpop.eup %3622 }
 0x131   :  { %v3625_v1 = vpop.eup %3624  ;;  %v290_v4 = vmul.f32 0.0, %v3623_v61 }
 0x132   :  { %v262_v7 = vmul.f32 0.0, %v3625_v1 }
 0x194   :  { %v293_v62 = vpop.permute.xlu0 %292 }
 0x195   :  { %v295_v63 = vmul.f32 %v3623_v61, %v293_v62 }
 0x197   :  { %297 = vrot.lane.b32.xlu1 %v295_v63, %s3870_s4 }
 0x198   :  { %v265_v2 = vpop.permute.xlu0 %264 }
 0x199   :  { %v267_v3 = vmul.f32 %v3625_v1, %v265_v2 }
 0x19b   :  { %269 = vrot.lane.b32.xlu1 %v267_v3, %s3870_s4 }
 0x209   :  { %v298_v5 = vpop.permute.xlu1 %297 }
 0x20a   :  { %v4089_v6 = vadd.f32 %v298_v5, %v290_v4 }
 0x20c   :  { %3626 = vtanh.f32 %v4089_v6  ;;  %v435_v56 = vrot.slane %v4089_v6, 2 }
 0x20d   :  { %v270_v8 = vpop.permute.xlu1 %269 }
 0x20e   :  { %v272_v9 = vadd.f32 %v270_v8, %v262_v7 }
 0x210   :  { %3628 = vtanh.f32 %v272_v9  ;;  %v404_v55 = vrot.slane %v272_v9, 6 }
 0x216   :  { %v3627_v10 = vpop.eup %3626 }
 0x217   :  { %303 = vrot.lane.b32.xlu0 %v3627_v10, %s3869_s2 }
 0x21a   :  { %v3629_v12 = vpop.eup %3628 }
 0x21b   :  { %275 = vrot.lane.b32.xlu1 %v3629_v12, %s3869_s2 }
 0x289   :  { %v304_v13 = vpop.permute.xlu0 %303 }
 0x28a   :  { %v4094_v14 = vmul.f32 %v3623_v61, %v304_v13 }
 0x28c   :  { %v312_v17 = vrot.slane %v4094_v14, 4 }
 0x28d   :  { %v276_v18 = vpop.permute.xlu1 %275 }
 0x28e   :  { %v278_v19 = vmul.f32 %v3625_v1, %v276_v18  ;;  %313 = vrot.lane.b32.xlu1 %v312_v17, %s3869_s2 }
 0x290   :  { %308 = vrot.lane.b32.xlu0 %v278_v19, %s3870_s4 }
 0x300   :  { %v314_v20 = vpop.permute.xlu1 %313 }
 0x302   :  { %v4101_v22 = vpop.permute.xlu0 %308 }
 0x303   :  { %v317_v24 = vsel %vm316_vm1, %v4101_v22, %v314_v20 }
 0x304   :  { %3100 = vmatmul.mubr.msk.f32.vlgmr.msra.gmra.mrb[0].mxu0 %vm179_vm2, %v317_v24 }
 0x305   :  { %3343 = vmatpush1.bf16.msra.mxu0 %v3985_v15  ;;  %675 = vmatprep.mubr.f32.mxu0 %v3868_v0 }
 0x306   :  { %3345 = vmatprep.subr.bf16.mxu0 %v3988_v16 }
 0x309   :  { %3347 = vmatpush1.bf16.msra.mxu0 %v4007_v21 }
 0x30a   :  { %3349 = vmatprep.subr.bf16.mxu0 %v4014_v23 }
 0x30d   :  { %3351 = vmatpush1.bf16.msra.mxu0 %v4032_v28 }
 0x30e   :  { %3353 = vmatprep.subr.bf16.mxu0 %v4036_v29 }
 0x311   :  { %3355 = vmatpush1.bf16.msra.mxu0 %v4047_v32 }
 0x312   :  { %3373 = vmatprep.subr.bf16.mxu0 %v3974_v11 }
 0x3d7   :  { %v387_v25 = vpop.f32.mrb[0].mxu0 }
 0x3d8   :  { %v393_v26 = vrot.slane %v387_v25, 6  ;;  %v389_v27 = vpop.f32.mrb[1].mxu0 }
 0x3d9   :  { %v424_v30 = vrot.slane %v389_v27, 6 }
 0x3da   :  { %v395_v31 = vadd.f32 %v393_v26, %v4081_v50 }
 0x3db   :  { %v426_v33 = vadd.f32 %v424_v30, %v4079_v48 }
 0x3dc   :  { %3630 = vtanh.f32 %v395_v31  ;;  %v3101_v39 = vmul.f32 -1.442695, %v395_v31 }
 0x3dd   :  { %3632 = vtanh.f32 %v426_v33  ;;  %v3102_v40 = vmul.f32 -1.442695, %v426_v33 }
 0x3de   :  { %3634 = vpow2.f32 %v3101_v39 }
 0x3df   :  { %3636 = vpow2.f32 %v3102_v40 }
 0x3e6   :  { %v3631_v36 = vpop.eup %3630 }
 0x3e7   :  { %v3633_v37 = vpop.eup %3632  ;;  %408 = vrot.lane.b32.xlu0 %v3631_v36, %s3869_s2 }
 0x3e8   :  { %439 = vrot.lane.b32.xlu1 %v3633_v37, %s3869_s2  ;;  %v3635_v42 = vpop.eup %3634 }
 0x3e9   :  { %v3637_v43 = vpop.eup %3636  ;;  %v399_v45 = vadd.f32 1.0, %v3635_v42 }
 0x3ea   :  { %v430_v46 = vadd.f32 1.0, %v3637_v43 }
 0x3eb   :  { %3638 = vrcp.f32 %v399_v45 }
 0x3ec   :  { %3640 = vrcp.f32 %v430_v46 }
 0x3f5   :  { %v3639_v47 = vpop.eup %3638 }
 0x3f6   :  { %v3641_v51 = vpop.eup %3640  ;;  %v406_v57 = vmul.f32 %v3639_v47, %v404_v55 }
 0x3f7   :  { %v437_v59 = vmul.f32 %v3641_v51, %v435_v56 }
 0x459   :  { %v409_v49 = vpop.permute.xlu0 %408 }
 0x45a   :  { %v411_v52 = vmul.f32 %v3639_v47, %v409_v49  ;;  %v440_v53 = vpop.permute.xlu1 %439 }
 0x45b   :  { %v442_v54 = vmul.f32 %v3641_v51, %v440_v53 }
 0x45c   :  { %413 = vrot.lane.b32.xlu0 %v411_v52, %s3870_s4 }
 0x45d   :  { %444 = vrot.lane.b32.xlu1 %v442_v54, %s3870_s4 }
 0x4ce   :  { %v414_v58 = vpop.permute.xlu0 %413 }
 0x4cf   :  { %v4122_v60 = vadd.f32 %v414_v58, %v406_v57  ;;  %v445_v61 = vpop.permute.xlu1 %444 }
 0x4d0   :  { %v447_v62 = vadd.f32 %v445_v61, %v437_v59 }
 0x4d1   :  { %3642 = vtanh.f32 %v4122_v60  ;;  %v550_v43 = vrot.slane %v4122_v60, 6 }
 0x4d2   :  { %3644 = vtanh.f32 %v447_v62  ;;  %v578_v42 = vrot.slane %v447_v62, 2 }
 0x4db   :  { %v3643_v63 = vpop.eup %3642 }
 0x4dc   :  { %v3645_v1 = vpop.eup %3644  ;;  %419 = vrot.lane.b32.xlu0 %v3643_v63, %s3869_s2 }
 0x4dd   :  { %450 = vrot.lane.b32.xlu1 %v3645_v1, %s3869_s2 }
 0x54e   :  { %v420_v2 = vpop.permute.xlu0 %419 }
 0x54f   :  { %v4127_v3 = vmul.f32 %v3639_v47, %v420_v2  ;;  %v451_v4 = vpop.permute.xlu1 %450 }
 0x550   :  { %v4129_v5 = vmul.f32 %v3641_v51, %v451_v4 }
 0x551   :  { %455 = vrot.lane.b32.xlu0 %v4127_v3, %s3870_s4 }
 0x552   :  { %459 = vrot.lane.b32.xlu1 %v4129_v5, %s3869_s2 }
 0x5c3   :  { %v456_v6 = vpop.permute.xlu0 %455 }
 0x5c4   :  { %v460_v7 = vpop.permute.xlu1 %459 }
 0x5c5   :  { %v462_v8 = vsel %vm316_vm1, %v456_v6, %v460_v7 }
 0x5c6   :  { %v464_v9 = vrot.slane %v462_v8, 2 }
 0x5c8   :  { %3103 = vmatmul.mubr.msk.f32.vlgmr.msra.gmra.mrb[6].mxu1 %vm179_vm2, %v464_v9 }
 0x5c9   :  { %3359 = vmatpush1.bf16.msra.mxu1 %v3985_v15  ;;  %821 = vmatprep.mubr.f32.mxu1 %v3868_v0 }
 0x5ca   :  { %3361 = vmatprep.subr.bf16.mxu1 %v3988_v16 }
 0x5cd   :  { %3363 = vmatpush1.bf16.msra.mxu1 %v4007_v21 }
 0x5ce   :  { %3365 = vmatprep.subr.bf16.mxu1 %v4014_v23 }
 0x5d1   :  { %3367 = vmatpush1.bf16.msra.mxu1 %v4032_v28 }
 0x5d2   :  { %3369 = vmatprep.subr.bf16.mxu1 %v4036_v29 }
 0x5d5   :  { %3371 = vmatpush1.bf16.msra.mxu1 %v4047_v32 }
 0x5d6   :  { %3389 = vmatprep.subr.bf16.mxu1 %v3974_v11 }
 0x69b   :  { %v533_v10 = vpop.f32.mrb[6].mxu1 }
 0x69c   :  { %v539_v12 = vrot.slane %v533_v10, 4  ;;  %v535_v13 = vpop.f32.mrb[7].mxu1 }
 0x69d   :  { %v569_v18 = vadd.f32 %v535_v13, %v4079_v48 }
 0x69e   :  { %v541_v19 = vadd.f32 %v539_v12, %v4081_v50 }
 0x69f   :  { %3646 = vtanh.f32 %v569_v18  ;;  %v3105_v25 = vmul.f32 -1.442695, %v569_v18 }
 0x6a0   :  { %3648 = vtanh.f32 %v541_v19  ;;  %v3104_v26 = vmul.f32 -1.442695, %v541_v19 }
 0x6a1   :  { %3650 = vpow2.f32 %v3105_v25 }
 0x6a2   :  { %3652 = vpow2.f32 %v3104_v26 }
 0x6a9   :  { %v3647_v20 = vpop.eup %3646 }
 0x6aa   :  { %v3649_v24 = vpop.eup %3648  ;;  %582 = vrot.lane.b32.xlu0 %v3647_v20, %s3869_s2 }
 0x6ab   :  { %554 = vrot.lane.b32.xlu1 %v3649_v24, %s3869_s2  ;;  %v3651_v11 = vpop.eup %3650 }
 0x6ac   :  { %v3653_v27 = vpop.eup %3652  ;;  %v573_v30 = vadd.f32 1.0, %v3651_v11 }
 0x6ad   :  { %v545_v31 = vadd.f32 1.0, %v3653_v27 }
 0x6ae   :  { %3654 = vrcp.f32 %v573_v30 }
 0x6af   :  { %3656 = vrcp.f32 %v545_v31 }
 0x6b8   :  { %v3655_v48 = vpop.eup %3654 }
 0x6b9   :  { %v3657_v36 = vpop.eup %3656  ;;  %v580_v45 = vmul.f32 %v3655_v48, %v578_v42 }
 0x6ba   :  { %v552_v47 = vmul.f32 %v3657_v36, %v550_v43 }
 0x71c   :  { %v583_v33 = vpop.permute.xlu0 %582 }
 0x71d   :  { %v585_v37 = vmul.f32 %v3655_v48, %v583_v33  ;;  %v555_v39 = vpop.permute.xlu1 %554 }
 0x71e   :  { %v557_v40 = vmul.f32 %v3657_v36, %v555_v39 }
 0x71f   :  { %587 = vrot.lane.b32.xlu0 %v585_v37, %s3870_s4 }
 0x720   :  { %559 = vrot.lane.b32.xlu1 %v557_v40, %s3870_s4 }
 0x791   :  { %v588_v46 = vpop.permute.xlu0 %587 }
 0x792   :  { %v4153_v49 = vadd.f32 %v588_v46, %v580_v45  ;;  %v560_v51 = vpop.permute.xlu1 %559 }
 0x793   :  { %v562_v52 = vadd.f32 %v560_v51, %v552_v47 }
 0x794   :  { %3658 = vtanh.f32 %v4153_v49 }
 0x795   :  { %3660 = vtanh.f32 %v562_v52  ;;  %v694_v31 = vrot.slane %v562_v52, 6 }
 0x79e   :  { %v3659_v53 = vpop.eup %3658 }
 0x79f   :  { %v3661_v54 = vpop.eup %3660  ;;  %593 = vrot.lane.b32.xlu0 %v3659_v53, %s3869_s2 }
 0x7a0   :  { %565 = vrot.lane.b32.xlu1 %v3661_v54, %s3869_s2 }
 0x811   :  { %v594_v55 = vpop.permute.xlu0 %593 }
 0x812   :  { %v4158_v56 = vmul.f32 %v3655_v48, %v594_v55  ;;  %v566_v57 = vpop.permute.xlu1 %565  ;;  %v725_v48 = vrot.slane %v4153_v49, 2 }
 0x813   :  { %v4160_v58 = vmul.f32 %v3657_v36, %v566_v57 }
 0x814   :  { %v602_v59 = vrot.slane %v4158_v56, 4 }
 0x815   :  { %598 = vrot.lane.b32.xlu0 %v4160_v58, %s3870_s4 }
 0x816   :  { %603 = vrot.lane.b32.xlu1 %v602_v59, %s3869_s2 }
 0x887   :  { %v599_v60 = vpop.permute.xlu0 %598 }
 0x888   :  { %v604_v61 = vpop.permute.xlu1 %603 }
 0x889   :  { %v606_v62 = vsel %vm316_vm1, %v599_v60, %v604_v61 }
 0x88a   :  { %v608_v63 = vrot.slane %v606_v62, 4 }
 0x88c   :  { %3106 = vmatmul.mubr.msk.f32.vlgmr.msra.gmra.mrb[2].mxu0 %vm179_vm2, %v608_v63 }
 0x88d   :  { %3375 = vmatpush1.bf16.msra.mxu0 %v3985_v15  ;;  %964 = vmatprep.mubr.f32.mxu0 %v3868_v0 }
 0x88e   :  { %3377 = vmatprep.subr.bf16.mxu0 %v3988_v16 }
 0x891   :  { %3379 = vmatpush1.bf16.msra.mxu0 %v4007_v21 }
 0x892   :  { %3381 = vmatprep.subr.bf16.mxu0 %v4014_v23 }
 0x895   :  { %3383 = vmatpush1.bf16.msra.mxu0 %v4032_v28 }
 0x896   :  { %3385 = vmatprep.subr.bf16.mxu0 %v4036_v29 }
 0x899   :  { %3387 = vmatpush1.bf16.msra.mxu0 %v4047_v32 }
 0x95f   :  { %v677_v1 = vpop.f32.mrb[2].mxu0 }
 0x960   :  { %v683_v2 = vrot.slane %v677_v1, 2  ;;  %v679_v4 = vpop.f32.mrb[3].mxu0 }
 0x961   :  { %v714_v6 = vrot.slane %v679_v4, 2 }
 0x962   :  { %v685_v7 = vadd.f32 %v683_v2, %v4081_v50 }
 0x963   :  { %v716_v8 = vadd.f32 %v714_v6, %v4073_v41 }
 0x964   :  { %3662 = vtanh.f32 %v685_v7  ;;  %v3107_v12 = vmul.f32 -1.442695, %v685_v7 }
 0x965   :  { %3664 = vtanh.f32 %v716_v8  ;;  %v3108_v13 = vmul.f32 -1.442695, %v716_v8 }
 0x966   :  { %3666 = vpow2.f32 %v3107_v12 }
 0x967   :  { %3668 = vpow2.f32 %v3108_v13 }
 0x96e   :  { %v3663_v9 = vpop.eup %3662 }
 0x96f   :  { %v3665_v10 = vpop.eup %3664  ;;  %698 = vrot.lane.b32.xlu0 %v3663_v9, %s3869_s2 }
 0x970   :  { %729 = vrot.lane.b32.xlu1 %v3665_v10, %s3869_s2  ;;  %v3667_v18 = vpop.eup %3666 }
 0x971   :  { %v3669_v19 = vpop.eup %3668  ;;  %v689_v20 = vadd.f32 1.0, %v3667_v18 }
 0x972   :  { %v720_v24 = vadd.f32 1.0, %v3669_v19 }
 0x973   :  { %3670 = vrcp.f32 %v689_v20 }
 0x974   :  { %3672 = vrcp.f32 %v720_v24 }
 0x97d   :  { %v3671_v50 = vpop.eup %3670 }
 0x97e   :  { %v3673_v26 = vpop.eup %3672  ;;  %v696_v33 = vmul.f32 %v3671_v50, %v694_v31 }
 0x97f   :  { %v727_v37 = vmul.f32 %v3673_v26, %v725_v48 }
 0x9e1   :  { %v699_v25 = vpop.permute.xlu0 %698 }
 0x9e2   :  { %v701_v11 = vmul.f32 %v3671_v50, %v699_v25  ;;  %v730_v27 = vpop.permute.xlu1 %729 }
 0x9e3   :  { %v732_v30 = vmul.f32 %v3673_v26, %v730_v27 }
 0x9e4   :  { %703 = vrot.lane.b32.xlu0 %v701_v11, %s3870_s4 }
 0x9e5   :  { %734 = vrot.lane.b32.xlu1 %v732_v30, %s3870_s4 }
 0xa56   :  { %v704_v36 = vpop.permute.xlu0 %703 }
 0xa57   :  { %v706_v39 = vadd.f32 %v704_v36, %v696_v33  ;;  %v735_v40 = vpop.permute.xlu1 %734 }
 0xa58   :  { %v737_v42 = vadd.f32 %v735_v40, %v727_v37 }
 0xa59   :  { %3674 = vtanh.f32 %v706_v39  ;;  %v837_v9 = vrot.slane %v706_v39, 6 }
 0xa5a   :  { %3676 = vtanh.f32 %v737_v42  ;;  %v868_v12 = vrot.slane %v737_v42, 2 }
 0xa63   :  { %v3675_v43 = vpop.eup %3674 }
 0xa64   :  { %v3677_v45 = vpop.eup %3676  ;;  %709 = vrot.lane.b32.xlu0 %v3675_v43, %s3869_s2 }
 0xa65   :  { %740 = vrot.lane.b32.xlu1 %v3677_v45, %s3869_s2 }
 0xad6   :  { %v710_v46 = vpop.permute.xlu0 %709 }
 0xad7   :  { %v4185_v47 = vmul.f32 %v3671_v50, %v710_v46  ;;  %v741_v51 = vpop.permute.xlu1 %740 }
 0xad8   :  { %v4187_v52 = vmul.f32 %v3673_v26, %v741_v51 }
 0xad9   :  { %745 = vrot.lane.b32.xlu0 %v4185_v47, %s3870_s4 }
 0xada   :  { %749 = vrot.lane.b32.xlu1 %v4187_v52, %s3869_s2 }
 0xb4b   :  { %v746_v49 = vpop.permute.xlu0 %745 }
 0xb4c   :  { %v750_v53 = vpop.permute.xlu1 %749 }
 0xb4d   :  { %v752_v54 = vsel %vm316_vm1, %v746_v49, %v750_v53 }
 0xb4e   :  { %v754_v55 = vrot.slane %v752_v54, 6 }
 0xb50   :  { %3109 = vmatmul.mubr.msk.f32.vlgmr.msra.gmra.mrb[8].mxu1 %vm179_vm2, %v754_v55 }
 0xb51   :  { %3391 = vmatpush1.bf16.msra.mxu1 %v3985_v15  ;;  %1110 = vmatprep.mubr.f32.mxu1 %v3868_v0 }
 0xb52   :  { %3393 = vmatprep.subr.bf16.mxu1 %v3988_v16 }
 0xb55   :  { %3395 = vmatpush1.bf16.msra.mxu1 %v4007_v21 }
 0xb56   :  { %3397 = vmatprep.subr.bf16.mxu1 %v4014_v23 }
 0xb59   :  { %3399 = vmatpush1.bf16.msra.mxu1 %v4032_v28 }
 0xb5a   :  { %3401 = vmatprep.subr.bf16.mxu1 %v4036_v29 }
 0xb5d   :  { %3403 = vmatpush1.bf16.msra.mxu1 %v4047_v32 }
 0xc23   :  { %v823_v57 = vpop.f32.mrb[8].mxu1 }
 0xc24   :  { %v828_v59 = vadd.f32 %v823_v57, %v4077_v44  ;;  %v825_v60 = vpop.f32.mrb[9].mxu1 }
 0xc25   :  { %v857_v61 = vrot.slane %v825_v60, 4 }
 0xc26   :  { %3678 = vtanh.f32 %v828_v59  ;;  %v3110_v23 = vmul.f32 -1.442695, %v828_v59 }
 0xc27   :  { %v859_v15 = vadd.f32 %v857_v61, %v4073_v41 }
 0xc29   :  { %3680 = vtanh.f32 %v859_v15  ;;  %v3111_v28 = vmul.f32 -1.442695, %v859_v15 }
 0xc2a   :  { %3682 = vpow2.f32 %v3110_v23 }
 0xc2b   :  { %3684 = vpow2.f32 %v3111_v28 }
 0xc30   :  { %v3679_v16 = vpop.eup %3678 }
 0xc31   :  { %841 = vrot.lane.b32.xlu1 %v3679_v16, %s3869_s2 }
 0xc33   :  { %v3681_v21 = vpop.eup %3680 }
 0xc34   :  { %872 = vrot.lane.b32.xlu0 %v3681_v21, %s3869_s2  ;;  %v3683_v29 = vpop.eup %3682 }
 0xc35   :  { %v3685_v32 = vpop.eup %3684  ;;  %v832_v62 = vadd.f32 1.0, %v3683_v29 }
 0xc36   :  { %v863_v63 = vadd.f32 1.0, %v3685_v32 }
 0xc37   :  { %3686 = vrcp.f32 %v832_v62 }
 0xc38   :  { %3688 = vrcp.f32 %v863_v63 }
 0xc41   :  { %v3687_v1 = vpop.eup %3686 }
 0xc42   :  { %v3689_v6 = vpop.eup %3688  ;;  %v839_v10 = vmul.f32 %v3687_v1, %v837_v9 }
 0xc43   :  { %v870_v19 = vmul.f32 %v3689_v6, %v868_v12 }
 0xca3   :  { %v842_v2 = vpop.permute.xlu1 %841 }
 0xca4   :  { %v844_v4 = vmul.f32 %v3687_v1, %v842_v2 }
 0xca6   :  { %846 = vrot.lane.b32.xlu1 %v844_v4, %s3870_s4  ;;  %v873_v7 = vpop.permute.xlu0 %872 }
 0xca7   :  { %v875_v8 = vmul.f32 %v3689_v6, %v873_v7 }
 0xca9   :  { %877 = vrot.lane.b32.xlu0 %v875_v8, %s3870_s4 }
 0xd18   :  { %v847_v13 = vpop.permute.xlu1 %846 }
 0xd19   :  { %v849_v18 = vadd.f32 %v847_v13, %v839_v10 }
 0xd1b   :  { %3690 = vtanh.f32 %v849_v18  ;;  %v878_v20 = vpop.permute.xlu0 %877  ;;  %v983_v28 = vrot.slane %v849_v18, 6 }
 0xd1c   :  { %v880_v24 = vadd.f32 %v878_v20, %v870_v19 }
 0xd1e   :  { %3692 = vtanh.f32 %v880_v24  ;;  %v1014_v29 = vrot.slane %v880_v24, 2 }
 0xd25   :  { %v3691_v50 = vpop.eup %3690 }
 0xd26   :  { %852 = vrot.lane.b32.xlu1 %v3691_v50, %s3869_s2 }
 0xd28   :  { %v3693_v25 = vpop.eup %3692 }
 0xd29   :  { %883 = vrot.lane.b32.xlu0 %v3693_v25, %s3869_s2 }
 0xd98   :  { %v853_v26 = vpop.permute.xlu1 %852 }
 0xd99   :  { %v855_v11 = vmul.f32 %v3687_v1, %v853_v26 }
 0xd9b   :  { %888 = vrot.lane.b32.xlu0 %v855_v11, %s3870_s4  ;;  %v884_v27 = vpop.permute.xlu0 %883 }
 0xd9c   :  { %v4212_v30 = vmul.f32 %v3689_v6, %v884_v27 }
 0xd9e   :  { %v892_v31 = vrot.slane %v4212_v30, 4  ;;  %v1577_v30 = vrot.slane %v4160_v58, 4 }
 0xda0   :  { %893 = vrot.lane.b32.xlu1 %v892_v31, %s3869_s2 }
 0xe0d   :  { %v4218_v48 = vpop.permute.xlu0 %888 }
 0xe12   :  { %v894_v33 = vpop.permute.xlu1 %893 }
 0xe13   :  { %v896_v36 = vsel %vm316_vm1, %v4218_v48, %v894_v33 }
 0xe14   :  { %3112 = vmatmul.mubr.msk.f32.vlgmr.msra.gmra.mrb[4].mxu0 %vm179_vm2, %v896_v36 }
 0xe15   :  { %1273 = vmatprep.mubr.f32.mxu0 %v3868_v0 }
 0xee7   :  { %v966_v37 = vpop.f32.mrb[4].mxu0 }
 0xee8   :  { %v972_v39 = vrot.slane %v966_v37, 6  ;;  %v968_v40 = vpop.f32.mrb[5].mxu0 }
 0xee9   :  { %v1003_v42 = vrot.slane %v968_v40, 6 }
 0xeea   :  { %v974_v43 = vadd.f32 %v972_v39, %v4077_v44 }
 0xeeb   :  { %v1005_v45 = vadd.f32 %v1003_v42, %v4073_v41 }
 0xeec   :  { %3694 = vtanh.f32 %v974_v43  ;;  %v3113_v49 = vmul.f32 -1.442695, %v974_v43 }
 0xeed   :  { %3696 = vtanh.f32 %v1005_v45  ;;  %v3114_v53 = vmul.f32 -1.442695, %v1005_v45 }
 0xeee   :  { %3698 = vpow2.f32 %v3113_v49 }
 0xeef   :  { %3700 = vpow2.f32 %v3114_v53 }
 0xef6   :  { %v3695_v46 = vpop.eup %3694 }
 0xef7   :  { %v3697_v51 = vpop.eup %3696  ;;  %987 = vrot.lane.b32.xlu0 %v3695_v46, %s3869_s2 }
 0xef8   :  { %1018 = vrot.lane.b32.xlu1 %v3697_v51, %s3869_s2  ;;  %v3699_v54 = vpop.eup %3698 }
 0xef9   :  { %v3701_v55 = vpop.eup %3700  ;;  %v978_v57 = vadd.f32 1.0, %v3699_v54 }
 0xefa   :  { %v1009_v59 = vadd.f32 1.0, %v3701_v55 }
 0xefb   :  { %3702 = vrcp.f32 %v978_v57 }
 0xefc   :  { %3704 = vrcp.f32 %v1009_v59 }
 0xf05   :  { %v3703_v60 = vpop.eup %3702 }
 0xf06   :  { %v3705_v15 = vpop.eup %3704  ;;  %v985_v32 = vmul.f32 %v3703_v60, %v983_v28 }
 0xf07   :  { %v1016_v63 = vmul.f32 %v3705_v15, %v1014_v29  ;;  %v1186_v29 = vld [vmem:[#allocation2 + $0x50] sm:$0xff] }
 0xf69   :  { %v988_v61 = vpop.permute.xlu0 %987 }
 0xf6a   :  { %v990_v16 = vmul.f32 %v3703_v60, %v988_v61  ;;  %v1019_v21 = vpop.permute.xlu1 %1018 }
 0xf6b   :  { %v1021_v23 = vmul.f32 %v3705_v15, %v1019_v21  ;;  %v1187_v21 = vld [vmem:[#allocation2 + $0x58] sm:$0xff] }
 0xf6c   :  { %992 = vrot.lane.b32.xlu0 %v990_v16, %s3870_s4  ;;  %v1185_v16 = vld [vmem:[#allocation2 + $0x48] sm:$0xff] }
 0xf6d   :  { %1023 = vrot.lane.b32.xlu1 %v1021_v23, %s3870_s4  ;;  %v1184_v23 = vld [vmem:[#allocation2 + $0x40] sm:$0xff]  ;;  %v4249_v28 = vpack.c.bf16 %v1187_v21, %v1185_v16 }
 0xf6f   :  { %3405 = vmatprep.subr.bf16.mxu0 %v4249_v28  ;;  %3421 = vmatprep.subr.bf16.mxu1 %v4249_v28 }
 0xfde   :  { %v993_v62 = vpop.permute.xlu0 %992 }
 0xfdf   :  { %v995_v1 = vadd.f32 %v993_v62, %v985_v32  ;;  %v1024_v2 = vpop.permute.xlu1 %1023  ;;  %v1189_v32 = vld [vmem:[#allocation2 + $0x68] sm:$0xff]  ;;  %v1191_v62 = vld [vmem:[#allocation2 + $0x78] sm:$0xff] }
 0xfe0   :  { %v1026_v4 = vadd.f32 %v1024_v2, %v1016_v63  ;;  %v4251_v2 = vpack.c.bf16 %v1186_v29, %v1184_v23 }
 0xfe1   :  { %3706 = vtanh.f32 %v995_v1  ;;  %v1129_v54 = vrot.slane %v995_v1, 6  ;;  %v4253_v1 = vpack.c.bf16 %v1191_v62, %v1189_v32  ;;  %v1653_v62 = vrot.slane %v4187_v52, 6 }
 0xfe2   :  { %3708 = vtanh.f32 %v1026_v4  ;;  %v1157_v53 = vrot.slane %v1026_v4, 2  ;;  %v1188_v4 = vld [vmem:[#allocation2 + $0x60] sm:$0xff]  ;;  %3407 = vmatpush1.bf16.msra.mxu0 %v4251_v2  ;;  %v1427_v52 = vrot.slane %v4127_v3, 2 }
 0xfe3   :  { %3409 = vmatprep.subr.bf16.mxu0 %v4253_v1 }
 0xfeb   :  { %v3707_v6 = vpop.eup %3706 }
 0xfec   :  { %v3709_v7 = vpop.eup %3708  ;;  %998 = vrot.lane.b32.xlu0 %v3707_v6, %s3869_s2  ;;  %v1190_v6 = vld [vmem:[#allocation2 + $0x70] sm:$0xff] }
 0xfed   :  { %1029 = vrot.lane.b32.xlu1 %v3709_v7, %s3869_s2  ;;  %v1177_v7 = vld [vmem:[#allocation2 + $0x8] sm:$0xff] }
0x105e   :  { %v999_v8 = vpop.permute.xlu0 %998 }
0x105f   :  { %v4232_v9 = vmul.f32 %v3703_v60, %v999_v8  ;;  %v1030_v10 = vpop.permute.xlu1 %1029 }
0x1060   :  { %v4234_v12 = vmul.f32 %v3705_v15, %v1030_v10  ;;  %v1179_v10 = vld [vmem:[#allocation2 + $0x18] sm:$0xff] }
0x1061   :  { %1034 = vrot.lane.b32.xlu0 %v4232_v9, %s3870_s4 }
0x1062   :  { %1038 = vrot.lane.b32.xlu1 %v4234_v12, %s3869_s2 }
0x10d3   :  { %v1035_v13 = vpop.permute.xlu0 %1034 }
0x10d4   :  { %v1039_v18 = vpop.permute.xlu1 %1038 }
0x10d5   :  { %v1041_v19 = vsel %vm316_vm1, %v1035_v13, %v1039_v18  ;;  %v4259_v13 = vpack.c.bf16 %v1190_v6, %v1188_v4  ;;  %v4262_v18 = vpack.c.bf16 %v1179_v10, %v1177_v7  ;;  %v2026_v10 = vrot.slane %v4232_v9, 2 }
0x10d6   :  { %v1043_v20 = vrot.slane %v1041_v19, 2 }
0x10d7   :  { %3411 = vmatpush1.bf16.msra.mxu0 %v4259_v13 }
0x10d8   :  { %3115 = vmatmul.mubr.msk.f32.vlgmr.msra.gmra.mrb[10].mxu1 %vm179_vm2, %v1043_v20  ;;  %3413 = vmatprep.subr.bf16.mxu0 %v4262_v18 }
0x10d9   :  { %1421 = vmatprep.mubr.f32.mxu1 %v3868_v0  ;;  %3423 = vmatpush1.bf16.msra.mxu1 %v4251_v2 }
0x10da   :  { %3425 = vmatprep.subr.bf16.mxu1 %v4253_v1 }
0x10dd   :  { %3427 = vmatpush1.bf16.msra.mxu1 %v4259_v13 }
0x10de   :  { %3429 = vmatprep.subr.bf16.mxu1 %v4262_v18 }
0x11ab   :  { %v1112_v24 = vpop.f32.mrb[10].mxu1 }
0x11ac   :  { %v1118_v50 = vrot.slane %v1112_v24, 4  ;;  %v1114_v25 = vpop.f32.mrb[11].mxu1 }
0x11ad   :  { %v1148_v26 = vadd.f32 %v1114_v25, %v4073_v41 }
0x11ae   :  { %v1120_v11 = vadd.f32 %v1118_v50, %v4077_v44 }
0x11af   :  { %3710 = vtanh.f32 %v1148_v26  ;;  %v3117_v36 = vmul.f32 -1.442695, %v1148_v26  ;;  %v1178_v26 = vld [vmem:[#allocation2 + $0x10] sm:$0xff] }
0x11b0   :  { %3712 = vtanh.f32 %v1120_v11  ;;  %v3116_v37 = vmul.f32 -1.442695, %v1120_v11  ;;  %v1183_v11 = vld [vmem:[#allocation2 + $0x38] sm:$0xff] }
0x11b1   :  { %3714 = vpow2.f32 %v3117_v36  ;;  %v1180_v36 = vld [vmem:[#allocation2 + $0x20] sm:$0xff] }
0x11b2   :  { %3716 = vpow2.f32 %v3116_v37  ;;  %v1182_v37 = vld [vmem:[#allocation2 + $0x30] sm:$0xff] }
0x11b3   :  { %v4289_v58 = vpack.c.bf16 %v1182_v37, %v1180_v36 }
0x11b9   :  { %v3711_v27 = vpop.eup %3710 }
0x11ba   :  { %v3713_v33 = vpop.eup %3712  ;;  %1161 = vrot.lane.b32.xlu0 %v3711_v27, %s3869_s2 }
0x11bb   :  { %1133 = vrot.lane.b32.xlu1 %v3713_v33, %s3869_s2  ;;  %v3715_v39 = vpop.eup %3714 }
0x11bc   :  { %v3717_v40 = vpop.eup %3716  ;;  %v1152_v42 = vadd.f32 1.0, %v3715_v39 }
0x11bd   :  { %v1124_v43 = vadd.f32 1.0, %v3717_v40 }
0x11be   :  { %3718 = vrcp.f32 %v1152_v42  ;;  %v2257_v42 = vld [vmem:[#allocation5 + $0x8] sm:$0xff] }
0x11bf   :  { %3720 = vrcp.f32 %v1124_v43 }
0x11c8   :  { %v3719_v41 = vpop.eup %3718 }
0x11c9   :  { %v3721_v45 = vpop.eup %3720  ;;  %v1159_v55 = vmul.f32 %v3719_v41, %v1157_v53 }
0x11ca   :  { %v1131_v59 = vmul.f32 %v3721_v45, %v1129_v54  ;;  %v4358_v54 = vld [vmem:[%s4542_s5] sm:$0x3] }
0x122c   :  { %v1162_v44 = vpop.permute.xlu0 %1161 }
0x122d   :  { %v1164_v46 = vmul.f32 %v3719_v41, %v1162_v44  ;;  %v1134_v51 = vpop.permute.xlu1 %1133  ;;  %v2258_v44 = vld [vmem:[#allocation5 + $0x10] sm:$0xff] }
0x122e   :  { %v1136_v49 = vmul.f32 %v3721_v45, %v1134_v51 }
0x122f   :  { %1166 = vrot.lane.b32.xlu0 %v1164_v46, %s3870_s4 }
0x1230   :  { %1138 = vrot.lane.b32.xlu1 %v1136_v49, %s3870_s4 }
0x12a1   :  { %v1167_v57 = vpop.permute.xlu0 %1166 }
0x12a2   :  { %v1169_v60 = vadd.f32 %v1167_v57, %v1159_v55  ;;  %v1139_v61 = vpop.permute.xlu1 %1138  ;;  %v4363_v55 = vrot.slane %v4358_v54, %v71_v38  ;;  %v1352_v38 = vrot.slane %v4234_v12, 2  ;;  %v1728_v12 = vrot.slane %v4185_v47, 6 }
0x12a3   :  { %v1141_v15 = vadd.f32 %v1139_v61, %v1131_v59 }
0x12a4   :  { %3722 = vtanh.f32 %v1169_v60 }
0x12a5   :  { %3724 = vtanh.f32 %v1141_v15 }
0x12ae   :  { %v3723_v63 = vpop.eup %3722 }
0x12af   :  { %v3725_v8 = vpop.eup %3724  ;;  %1172 = vrot.lane.b32.xlu0 %v3723_v63, %s3869_s2  ;;  %v1951_v63 = vrot.slane %v4129_v5, 2 }
0x12b0   :  { %1144 = vrot.lane.b32.xlu1 %v3725_v8, %s3869_s2 }
0x12b4   :  { %1503 = vrot.lane.b32.xlu1 %v892_v31, %s3870_s4  ;;  %v1176_v31 = vld [vmem:[#allocation2] sm:$0xff] }
0x12b5   :  { %v4283_v27 = vpack.c.bf16 %v1178_v26, %v1176_v31 }
0x12b8   :  { %1804 = vrot.lane.b32.xlu1 %v4158_v56, %s3870_s4  ;;  %v1181_v56 = vld [vmem:[#allocation2 + $0x28] sm:$0xff] }
0x12b9   :  { %v4285_v33 = vpack.c.bf16 %v1183_v11, %v1181_v56 }
0x1321   :  { %v1173_v19 = vpop.permute.xlu0 %1172 }
0x1322   :  { %v1175_v20 = vmul.f32 %v3719_v41, %v1173_v19  ;;  %v1145_v24 = vpop.permute.xlu1 %1144  ;;  %v3871_v41 = vmov 0.0|0.0  }
0x1323   :  { %v1147_v50 = vmul.f32 %v3721_v45, %v1145_v24  ;;  %v2259_v45 = vld [vmem:[#allocation5 + $0x18] sm:$0xff] }
0x1324   :  { %1205 = vrot.lane.b32.xlu0 %v1175_v20, %s3870_s4  ;;  %v4337_v51 = vpack.c.bf16 %v2259_v45, %v2258_v44 }
0x1325   :  { %v2178_v25 = vrot.slane %v1147_v50, 4 }
0x1326   :  { %v1504_v14 = vpop.permute.xlu1 %1503 }
0x1327   :  { %2179 = vrot.lane.b32.xlu1 %v2178_v25, %s3870_s4 }
0x1328   :  { %1578 = vrot.lane.b32.xlu0 %v1577_v30, %s3870_s4 }
0x132c   :  { %2102 = vrot.lane.b32.xlu0 %v312_v17, %s3870_s4 }
0x1396   :  { %v1206_v39 = vpop.permute.xlu0 %1205 }
0x1397   :  { %3118 = vmatmul.mubr.msk.f32.vlgmr.msra.gmra.mrb[6].mxu0 %vm316_vm1, %v1206_v39 }
0x1398   :  { %3415 = vmatpush1.bf16.msra.mxu0 %v4283_v27  ;;  %1345 = vmatprep.mubr.f32.mxu0 %v3868_v0 }
0x1399   :  { %3417 = vmatprep.subr.bf16.mxu0 %v4285_v33 }
0x139a   :  { %v1579_v17 = vpop.permute.xlu0 %1578 }
0x139c   :  { %3419 = vmatpush1.bf16.msra.mxu0 %v4289_v58 }
0x139d   :  { %3437 = vmatprep.subr.bf16.mxu0 %v4249_v28 }
0x139e   :  { %v2103_v40 = vpop.permute.xlu0 %2102 }
0x139f   :  { %3119 = vmatmul.mubr.msk.f32.vlgmr.msra.gmra.mrb[6].mxu0 %vm316_vm1, %v4101_v22  ;;  %v1805_v22 = vpop.permute.xlu1 %1804 }
0x13a0   :  { %3439 = vmatpush1.bf16.msra.mxu0 %v4251_v2  ;;  %1571 = vmatprep.mubr.f32.mxu0 %v3868_v0 }
0x13a1   :  { %3441 = vmatprep.subr.bf16.mxu0 %v4253_v1 }
0x13a3   :  { %v2180_v46 = vpop.permute.xlu1 %2179 }
0x13a4   :  { %3443 = vmatpush1.bf16.msra.mxu0 %v4259_v13 }
0x13a5   :  { %3445 = vmatprep.subr.bf16.mxu0 %v4262_v18 }
0x13a7   :  { %3122 = vmatmul.mubr.msk.f32.vlgmr.msra.gmra.mrb[8].mxu0 %vm316_vm1, %v1504_v14 }
0x13a8   :  { %3447 = vmatpush1.bf16.msra.mxu0 %v4283_v27  ;;  %1646 = vmatprep.mubr.f32.mxu0 %v3868_v0 }
0x13a9   :  { %3449 = vmatprep.subr.bf16.mxu0 %v4285_v33 }
0x13ac   :  { %3451 = vmatpush1.bf16.msra.mxu0 %v4289_v58 }
0x13ad   :  { %3469 = vmatprep.subr.bf16.mxu0 %v4249_v28 }
0x13af   :  { %3123 = vmatmul.mubr.msk.f32.vlgmr.msra.gmra.mrb[8].mxu0 %vm316_vm1, %v1579_v17 }
0x13b0   :  { %3471 = vmatpush1.bf16.msra.mxu0 %v4251_v2  ;;  %1872 = vmatprep.mubr.f32.mxu0 %v3868_v0 }
0x13b1   :  { %3473 = vmatprep.subr.bf16.mxu0 %v4253_v1 }
0x13b4   :  { %3475 = vmatpush1.bf16.msra.mxu0 %v4259_v13 }
0x13b5   :  { %3477 = vmatprep.subr.bf16.mxu0 %v4262_v18 }
0x13b7   :  { %3126 = vmatmul.mubr.msk.f32.vlgmr.msra.gmra.mrb[10].mxu0 %vm316_vm1, %v1805_v22 }
0x13b8   :  { %3479 = vmatpush1.bf16.msra.mxu0 %v4283_v27  ;;  %1944 = vmatprep.mubr.f32.mxu0 %v3868_v0 }
0x13b9   :  { %3481 = vmatprep.subr.bf16.mxu0 %v4285_v33 }
0x13bc   :  { %3483 = vmatpush1.bf16.msra.mxu0 %v4289_v58 }
0x13bd   :  { %3501 = vmatprep.subr.bf16.mxu0 %v4249_v28 }
0x13bf   :  { %3127 = vmatmul.mubr.msk.f32.vlgmr.msra.gmra.mrb[10].mxu0 %vm316_vm1, %v4218_v48  ;;  %v2256_v48 = vld [vmem:[#allocation5] sm:$0xff] }
0x13c0   :  { %3503 = vmatpush1.bf16.msra.mxu0 %v4251_v2  ;;  %2170 = vmatprep.mubr.f32.mxu0 %v3868_v0  ;;  %v4332_v43 = vpack.c.bf16 %v2257_v42, %v2256_v48 }
0x13c1   :  { %3505 = vmatprep.subr.bf16.mxu0 %v4253_v1 }
0x13c4   :  { %3507 = vmatpush1.bf16.msra.mxu0 %v4259_v13 }
0x13c5   :  { %3509 = vmatprep.subr.bf16.mxu0 %v4262_v18 }
0x13c7   :  { %3130 = vmatmul.mubr.msk.f32.vlgmr.msra.gmra.mrb[12].mxu0 %vm316_vm1, %v2103_v40 }
0x13c8   :  { %3511 = vmatpush1.bf16.msra.mxu0 %v4283_v27  ;;  %2247 = vmatprep.mubr.f32.mxu0 %v3868_v0 }
0x13c9   :  { %3513 = vmatprep.subr.bf16.mxu0 %v4285_v33 }
0x13cc   :  { %3515 = vmatpush1.bf16.msra.mxu0 %v4289_v58 }
0x13cd   :  { %3516 = vmatprep.subr.bf16.mxu0 %v3871_v41 }
0x13cf   :  { %3131 = vmatmul.mubr.msk.f32.vlgmr.msra.gmra.mrb[12].mxu0 %vm316_vm1, %v2180_v46 }
0x13d0   :  { %3518 = vmatpush3.bf16.msra.mxu0 %v4332_v43  ;;  %3200 = vmatprep.mubr.msk.f32.mxu0 %vm3872_vm3, %v3868_v0 }
0x13d1   :  { %3519 = vmatprep.subr.bf16.mxu0 %v3871_v41 }
0x13d4   :  { %3521 = vmatpush3.bf16.msra.mxu0 %v4337_v51 }
0x13d5   :  { %3528 = vmatprep.subr.bf16.mxu0 %v3871_v41 }
0x13d7   :  { %3201 = vmatmul.mubr.f32.vlgmr.msra.gmra.mrb[6].mxu0 %v3868_v0 }
0x13d8   :  { %3530 = vmatpush3.bf16.msra.mxu0 %v4332_v43  ;;  %3222 = vmatprep.mubr.msk.f32.mxu0 %vm3872_vm3, %v3868_v0 }
0x13d9   :  { %3531 = vmatprep.subr.bf16.mxu0 %v3871_v41 }
0x13dc   :  { %3533 = vmatpush3.bf16.msra.mxu0 %v4337_v51 }
0x13dd   :  { %3540 = vmatprep.subr.bf16.mxu0 %v3871_v41 }
0x14a2   :  { %v4351_v49 = vpop.f32.mrb[12].mxu0 }
0x14a3   :  { %v4353_v53 = vpop.f32.mrb[13].mxu0 }
0x14aa   :  { %v2328_v57 = vpop.f32.mrb[6].mxu0 }
0x14ab   :  { %v3570_v59 = vadd.f32 %v2328_v57, %v4363_v55  ;;  %v3202_v60 = vpop.f32.mrb[7].mxu0 }
0x14ad   :  { %3726 = vtanh.f32 %v3570_v59  ;;  %v3132_v15 = vmul.f32 -1.442695, %v3570_v59 }
0x14af   :  { %3728 = vpow2.f32 %v3132_v15 }
0x14b7   :  { %v3727_v61 = vpop.eup %3726 }
0x14b8   :  { %2342 = vrot.lane.b32.xlu0 %v3727_v61, %s3869_s2 }
0x14b9   :  { %v3729_v16 = vpop.eup %3728 }
0x14ba   :  { %v2336_v21 = vadd.f32 1.0, %v3729_v16 }
0x14bc   :  { %3730 = vrcp.f32 %v2336_v21 }
0x14c6   :  { %v3731_v23 = vpop.eup %3730 }
0x14c7   :  { %v2340_v4 = vmul.f32 0.0, %v3731_v23 }
0x152a   :  { %v2343_v29 = vpop.permute.xlu0 %2342 }
0x152b   :  { %v2345_v32 = vmul.f32 %v3731_v23, %v2343_v29 }
0x152d   :  { %2347 = vrot.lane.b32.xlu1 %v2345_v32, %s3870_s4 }
0x1531   :  { %1353 = vrot.lane.b32.xlu1 %v1352_v38, %s3870_s4 }
0x1535   :  { %1654 = vrot.lane.b32.xlu1 %v1653_v62, %s3870_s4 }
0x1539   :  { %1952 = vrot.lane.b32.xlu1 %v1951_v63, %s3870_s4 }
0x159f   :  { %v2348_v6 = vpop.permute.xlu1 %2347 }
0x15a0   :  { %v4374_v7 = vadd.f32 %v2348_v6, %v2340_v4 }
0x15a2   :  { %3732 = vtanh.f32 %v4374_v7 }
0x15a3   :  { %v1354_v8 = vpop.permute.xlu1 %1353 }
0x15a4   :  { %3120 = vmatmul.mubr.msk.f32.vlgmr.msra.gmra.mrb[12].mxu1 %vm316_vm1, %v1354_v8 }
0x15a5   :  { %3431 = vmatpush1.bf16.msra.mxu1 %v4283_v27  ;;  %1496 = vmatprep.mubr.f32.mxu1 %v3868_v0 }
0x15a6   :  { %3433 = vmatprep.subr.bf16.mxu1 %v4285_v33 }
0x15a7   :  { %v1655_v3 = vpop.permute.xlu1 %1654 }
0x15a9   :  { %3435 = vmatpush1.bf16.msra.mxu1 %v4289_v58 }
0x15aa   :  { %3453 = vmatprep.subr.bf16.mxu1 %v4249_v28 }
0x15ab   :  { %v1953_v9 = vpop.permute.xlu1 %1952 }
0x15ac   :  { %v3733_v5 = vpop.eup %3732 }
0x15ad   :  { %2353 = vrot.lane.b32.xlu0 %v3733_v5, %s3869_s2 }
0x15b1   :  { %1428 = vrot.lane.b32.xlu0 %v1427_v52, %s3870_s4 }
0x15b5   :  { %1729 = vrot.lane.b32.xlu0 %v1728_v12, %s3870_s4 }
0x15b9   :  { %2027 = vrot.lane.b32.xlu0 %v2026_v10, %s3870_s4 }
0x161f   :  { %v2354_v19 = vpop.permute.xlu0 %2353 }
0x1620   :  { %v2356_v20 = vmul.f32 %v3731_v23, %v2354_v19 }
0x1622   :  { %2358 = vrot.lane.b32.xlu1 %v2356_v20, %s3870_s4 }
0x1623   :  { %v1429_v24 = vpop.permute.xlu0 %1428 }
0x1624   :  { %3121 = vmatmul.mubr.msk.f32.vlgmr.msra.gmra.mrb[12].mxu1 %vm316_vm1, %v1429_v24 }
0x1625   :  { %3455 = vmatpush1.bf16.msra.mxu1 %v4251_v2  ;;  %1722 = vmatprep.mubr.f32.mxu1 %v3868_v0 }
0x1626   :  { %3457 = vmatprep.subr.bf16.mxu1 %v4253_v1 }
0x1627   :  { %v1730_v47 = vpop.permute.xlu0 %1729 }
0x1629   :  { %3459 = vmatpush1.bf16.msra.mxu1 %v4259_v13 }
0x162a   :  { %3461 = vmatprep.subr.bf16.mxu1 %v4262_v18 }
0x162c   :  { %3124 = vmatmul.mubr.msk.f32.vlgmr.msra.gmra.mrb[14].mxu1 %vm316_vm1, %v1655_v3 }
0x162d   :  { %3463 = vmatpush1.bf16.msra.mxu1 %v4283_v27  ;;  %1797 = vmatprep.mubr.f32.mxu1 %v3868_v0 }
0x162e   :  { %3465 = vmatprep.subr.bf16.mxu1 %v4285_v33 }
0x1631   :  { %3467 = vmatpush1.bf16.msra.mxu1 %v4289_v58 }
0x1632   :  { %3485 = vmatprep.subr.bf16.mxu1 %v4249_v28  ;;  %v2028_v28 = vpop.permute.xlu0 %2027 }
0x1634   :  { %3125 = vmatmul.mubr.msk.f32.vlgmr.msra.gmra.mrb[14].mxu1 %vm316_vm1, %v1730_v47 }
0x1635   :  { %3487 = vmatpush1.bf16.msra.mxu1 %v4251_v2  ;;  %2020 = vmatprep.mubr.f32.mxu1 %v3868_v0 }
0x1636   :  { %3489 = vmatprep.subr.bf16.mxu1 %v4253_v1 }
0x1639   :  { %3491 = vmatpush1.bf16.msra.mxu1 %v4259_v13 }
0x163a   :  { %3493 = vmatprep.subr.bf16.mxu1 %v4262_v18 }
0x163c   :  { %3128 = vmatmul.mubr.msk.f32.vlgmr.msra.gmra.mrb[16].mxu1 %vm316_vm1, %v1953_v9 }
0x163d   :  { %3495 = vmatpush1.bf16.msra.mxu1 %v4283_v27  ;;  %2095 = vmatprep.mubr.f32.mxu1 %v3868_v0 }
0x163e   :  { %3497 = vmatprep.subr.bf16.mxu1 %v4285_v33 }
0x1641   :  { %3499 = vmatpush1.bf16.msra.mxu1 %v4289_v58 }
0x1642   :  { %3522 = vmatprep.subr.bf16.mxu1 %v3871_v41 }
0x1644   :  { %3129 = vmatmul.mubr.msk.f32.vlgmr.msra.gmra.mrb[16].mxu1 %vm316_vm1, %v2028_v28 }
0x1645   :  { %3524 = vmatpush3.bf16.msra.mxu1 %v4332_v43  ;;  %3211 = vmatprep.mubr.msk.f32.mxu1 %vm3872_vm3, %v3868_v0 }
0x1646   :  { %3525 = vmatprep.subr.bf16.mxu1 %v3871_v41 }
0x1649   :  { %3527 = vmatpush3.bf16.msra.mxu1 %v4337_v51 }
0x164a   :  { %3534 = vmatprep.subr.bf16.mxu1 %v3871_v41 }
0x1694   :  { %v2359_v2 = vpop.permute.xlu1 %2358 }
0x1695   :  { %3212 = vmatmul.mubr.msk.f32.vlgmr.msra.gmra.mrb[12].mxu1 %vm316_vm1, %v2359_v2 }
0x1696   :  { %3536 = vmatpush3.bf16.msra.mxu1 %v4332_v43  ;;  %3233 = vmatprep.mubr.msk.f32.mxu1 %vm3872_vm3, %v3868_v0 }
0x1697   :  { %3537 = vmatprep.subr.bf16.mxu1 %v3871_v41 }
0x169a   :  { %3539 = vmatpush3.bf16.msra.mxu1 %v4337_v51 }
0x169b   :  { %3546 = vmatprep.subr.bf16.mxu1 %v3871_v41 }
0x1768   :  { %v2428_v1 = vpop.f32.mrb[12].mxu1 }
0x1769   :  { %v3571_v13 = vadd.f32 %v2428_v1, %v4363_v55  ;;  %v3213_v18 = vpop.f32.mrb[13].mxu1 }
0x176b   :  { %3734 = vtanh.f32 %v3571_v13  ;;  %v3134_v25 = vmul.f32 -1.442695, %v3571_v13 }
0x176d   :  { %3736 = vpow2.f32 %v3134_v25 }
0x1775   :  { %v3735_v50 = vpop.eup %3734 }
0x1776   :  { %2442 = vrot.lane.b32.xlu0 %v3735_v50, %s3869_s2 }
0x1777   :  { %v3737_v30 = vpop.eup %3736 }
0x1778   :  { %v2436_v31 = vadd.f32 1.0, %v3737_v30 }
0x177a   :  { %3738 = vrcp.f32 %v2436_v31 }
0x1784   :  { %v3739_v26 = vpop.eup %3738 }
0x1785   :  { %v2440_v27 = vmul.f32 %v3739_v26, %v4374_v7 }
0x17e8   :  { %v2443_v56 = vpop.permute.xlu0 %2442 }
0x17e9   :  { %v2445_v11 = vmul.f32 %v3739_v26, %v2443_v56 }
0x17eb   :  { %2447 = vrot.lane.b32.xlu1 %v2445_v11, %s3870_s4 }
0x185d   :  { %v2448_v33 = vpop.permute.xlu1 %2447 }
0x185e   :  { %v2450_v36 = vadd.f32 %v2448_v33, %v2440_v27 }
0x1860   :  { %3740 = vtanh.f32 %v2450_v36 }
0x186a   :  { %v3741_v37 = vpop.eup %3740 }
0x186b   :  { %2453 = vrot.lane.b32.xlu0 %v3741_v37, %s3869_s2 }
0x18dd   :  { %v2454_v39 = vpop.permute.xlu0 %2453 }
0x18de   :  { %v2456_v58 = vmul.f32 %v3739_v26, %v2454_v39 }
0x18e0   :  { %2458 = vrot.lane.b32.xlu1 %v2456_v58, %s3870_s4 }
0x1952   :  { %v2459_v14 = vpop.permute.xlu1 %2458 }
0x1953   :  { %3223 = vmatmul.mubr.msk.f32.vlgmr.msra.gmra.mrb[8].mxu0 %vm316_vm1, %v2459_v14 }
0x1954   :  { %3542 = vmatpush3.bf16.msra.mxu0 %v4332_v43  ;;  %3244 = vmatprep.mubr.msk.f32.mxu0 %vm3872_vm3, %v3868_v0 }
0x1955   :  { %3543 = vmatprep.subr.bf16.mxu0 %v3871_v41 }
0x1958   :  { %3545 = vmatpush3.bf16.msra.mxu0 %v4337_v51 }
0x1959   :  { %3558 = vmatprep.subr.bf16.mxu0 %v3871_v41 }
0x1a26   :  { %v2528_v17 = vpop.f32.mrb[8].mxu0 }
0x1a27   :  { %v3572_v22 = vadd.f32 %v2528_v17, %v4363_v55  ;;  %v3224_v40 = vpop.f32.mrb[9].mxu0 }
0x1a29   :  { %3742 = vtanh.f32 %v3572_v22  ;;  %v3136_v42 = vmul.f32 -1.442695, %v3572_v22 }
0x1a2b   :  { %3744 = vpow2.f32 %v3136_v42 }
0x1a33   :  { %v3743_v48 = vpop.eup %3742 }
0x1a34   :  { %2542 = vrot.lane.b32.xlu0 %v3743_v48, %s3869_s2 }
0x1a35   :  { %v3745_v44 = vpop.eup %3744 }
0x1a36   :  { %v2536_v45 = vadd.f32 1.0, %v3745_v44 }
0x1a38   :  { %3746 = vrcp.f32 %v2536_v45 }
0x1a42   :  { %v3747_v46 = vpop.eup %3746 }
0x1a43   :  { %v2540_v60 = vmul.f32 %v3747_v46, %v2450_v36 }
0x1aa6   :  { %v2543_v57 = vpop.permute.xlu0 %2542 }
0x1aa7   :  { %v2545_v59 = vmul.f32 %v3747_v46, %v2543_v57  ;;  %v1201_v57 = vrot.slane %v4358_v54, %v75_v35 }
0x1aa9   :  { %2547 = vrot.lane.b32.xlu1 %v2545_v59, %s3870_s4  ;;  %v2255_v59 = vadd.f32 %v4353_v53, %v1201_v57 }
0x1b1b   :  { %v2548_v61 = vpop.permute.xlu1 %2547 }
0x1b1c   :  { %v2550_v15 = vadd.f32 %v2548_v61, %v2540_v60 }
0x1b1e   :  { %3748 = vtanh.f32 %v2550_v15 }
0x1b28   :  { %v3749_v16 = vpop.eup %3748 }
0x1b29   :  { %2553 = vrot.lane.b32.xlu0 %v3749_v16, %s3869_s2  ;;  %v3145_v16 = vmul.f32 -1.442695, %v2255_v59 }
0x1b9b   :  { %v2554_v21 = vpop.permute.xlu0 %2553 }
0x1b9c   :  { %v2556_v23 = vmul.f32 %v3747_v46, %v2554_v21 }
0x1b9e   :  { %2558 = vrot.lane.b32.xlu1 %v2556_v23, %s3870_s4 }
0x1c10   :  { %v2559_v29 = vpop.permute.xlu1 %2558 }
0x1c11   :  { %3234 = vmatmul.mubr.msk.f32.vlgmr.msra.gmra.mrb[14].mxu1 %vm316_vm1, %v2559_v29 }
0x1c12   :  { %3548 = vmatpush3.bf16.msra.mxu1 %v4332_v43  ;;  %3255 = vmatprep.mubr.msk.f32.mxu1 %vm3872_vm3, %v3868_v0 }
0x1c13   :  { %3549 = vmatprep.subr.bf16.mxu1 %v3871_v41 }
0x1c16   :  { %3551 = vmatpush3.bf16.msra.mxu1 %v4337_v51 }
0x1c17   :  { %3552 = vmatprep.subr.bf16.mxu1 %v3871_v41 }
0x1ce4   :  { %v2628_v32 = vpop.f32.mrb[14].mxu1 }
0x1ce5   :  { %v3573_v38 = vadd.f32 %v2628_v32, %v4363_v55  ;;  %v3235_v62 = vpop.f32.mrb[15].mxu1 }
0x1ce7   :  { %3750 = vtanh.f32 %v3573_v38  ;;  %v3138_v4 = vmul.f32 -1.442695, %v3573_v38 }
0x1ce9   :  { %3752 = vpow2.f32 %v3138_v4 }
0x1cf1   :  { %v3751_v63 = vpop.eup %3750 }
0x1cf2   :  { %2642 = vrot.lane.b32.xlu0 %v3751_v63, %s3869_s2  ;;  %v2254_v63 = vadd.f32 %v4351_v49, %v4363_v55 }
0x1cf3   :  { %v3753_v6 = vpop.eup %3752 }
0x1cf4   :  { %v2636_v7 = vadd.f32 1.0, %v3753_v6 }
0x1cf6   :  { %3754 = vrcp.f32 %v2636_v7 }
0x1d00   :  { %v3755_v8 = vpop.eup %3754 }
0x1d01   :  { %v2640_v12 = vmul.f32 %v3755_v8, %v2550_v15 }
0x1d64   :  { %v2643_v5 = vpop.permute.xlu0 %2642 }
0x1d65   :  { %v2645_v52 = vmul.f32 %v3755_v8, %v2643_v5 }
0x1d67   :  { %2647 = vrot.lane.b32.xlu1 %v2645_v52, %s3870_s4 }
0x1dd9   :  { %v2648_v10 = vpop.permute.xlu1 %2647 }
0x1dda   :  { %v2650_v19 = vadd.f32 %v2648_v10, %v2640_v12 }
0x1ddc   :  { %3756 = vtanh.f32 %v2650_v19 }
0x1de6   :  { %v3757_v20 = vpop.eup %3756 }
0x1de7   :  { %2653 = vrot.lane.b32.xlu0 %v3757_v20, %s3869_s2 }
0x1e59   :  { %v2654_v24 = vpop.permute.xlu0 %2653 }
0x1e5a   :  { %v2656_v3 = vmul.f32 %v3755_v8, %v2654_v24 }
0x1e5c   :  { %2658 = vrot.lane.b32.xlu1 %v2656_v3, %s3870_s4 }
0x1ece   :  { %v2659_v47 = vpop.permute.xlu1 %2658 }
0x1ecf   :  { %3245 = vmatmul.mubr.msk.f32.vlgmr.msra.gmra.mrb[10].mxu0 %vm316_vm1, %v2659_v47 }
0x1ed0   :  { %3285 = vmatprep.mubr.msk.f32.mxu0 %vm3872_vm3, %v3868_v0 }
0x1fa2   :  { %v2728_v9 = vpop.f32.mrb[10].mxu0 }
0x1fa3   :  { %v3574_v28 = vadd.f32 %v2728_v9, %v4363_v55  ;;  %v3246_v2 = vpop.f32.mrb[11].mxu0  ;;  %v2990_v9 = vld [vmem:[%s4544_s7] sm:$0xff] }
0x1fa4   :  { %v2992_v2 = vld [vmem:[%s4544_s7 + $0x10] sm:$0xff] }
0x1fa5   :  { %3758 = vtanh.f32 %v3574_v28  ;;  %v3140_v13 = vmul.f32 -1.442695, %v3574_v28  ;;  %v2991_v28 = vld [vmem:[%s4544_s7 + $0x8] sm:$0xff] }
0x1fa7   :  { %3760 = vpow2.f32 %v3140_v13  ;;  %v2993_v13 = vld [vmem:[%s4544_s7 + $0x18] sm:$0xff] }
0x1faf   :  { %v3759_v1 = vpop.eup %3758 }
0x1fb0   :  { %2742 = vrot.lane.b32.xlu0 %v3759_v1, %s3869_s2  ;;  %v3559_v1 = vpack.c.bf16 %v2991_v28, %v2990_v9 }
0x1fb1   :  { %v3761_v18 = vpop.eup %3760 }
0x1fb2   :  { %v2736_v50 = vadd.f32 1.0, %v3761_v18  ;;  %3560 = vmatpush3.bf16.msra.mxu0 %v3559_v1  ;;  %v3562_v18 = vpack.c.bf16 %v2993_v13, %v2992_v2 }
0x1fb3   :  { %3561 = vmatprep.subr.bf16.mxu0 %v3871_v41 }
0x1fb4   :  { %3762 = vrcp.f32 %v2736_v50  ;;  %v2994_v50 = vld [vmem:[%s4544_s7 + $0x20] sm:$0xff] }
0x1fb6   :  { %3563 = vmatpush3.bf16.msra.mxu0 %v3562_v18 }
0x1fb7   :  { %3564 = vmatprep.subr.bf16.mxu0 %v3871_v41 }
0x1fbe   :  { %v3763_v25 = vpop.eup %3762 }
0x1fbf   :  { %v2740_v26 = vmul.f32 %v3763_v25, %v2650_v19 }
0x2022   :  { %v2743_v30 = vpop.permute.xlu0 %2742 }
0x2023   :  { %v2745_v31 = vmul.f32 %v3763_v25, %v2743_v30 }
0x2025   :  { %2747 = vrot.lane.b32.xlu1 %v2745_v31, %s3870_s4  ;;  %v2996_v31 = vld [vmem:[%s4544_s7 + $0x30] sm:$0xff] }
0x2097   :  { %v2748_v56 = vpop.permute.xlu1 %2747 }
0x2098   :  { %v2750_v11 = vadd.f32 %v2748_v56, %v2740_v26  ;;  %v2997_v26 = vld [vmem:[%s4544_s7 + $0x38] sm:$0xff] }
0x209a   :  { %3764 = vtanh.f32 %v2750_v11 }
0x20a4   :  { %v3765_v27 = vpop.eup %3764 }
0x20a5   :  { %2753 = vrot.lane.b32.xlu0 %v3765_v27, %s3869_s2 }
0x2117   :  { %v2754_v33 = vpop.permute.xlu0 %2753 }
0x2118   :  { %v2756_v36 = vmul.f32 %v3763_v25, %v2754_v33  ;;  %v2995_v25 = vld [vmem:[%s4544_s7 + $0x28] sm:$0xff] }
0x2119   :  { %v3565_v30 = vpack.c.bf16 %v2995_v25, %v2994_v50 }
0x211a   :  { %2758 = vrot.lane.b32.xlu1 %v2756_v36, %s3870_s4 }
0x211b   :  { %3566 = vmatpush3.bf16.msra.mxu0 %v3565_v30 }
0x211c   :  { %3567 = vmatprep.subr.bf16.mxu0 %v3871_v41 }
0x218c   :  { %v2759_v37 = vpop.permute.xlu1 %2758 }
0x218d   :  { %3256 = vmatmul.mubr.msk.f32.vlgmr.msra.gmra.mrb[16].mxu1 %vm316_vm1, %v2759_v37 }
0x218e   :  { %3554 = vmatpush3.bf16.msra.mxu1 %v4332_v43  ;;  %3266 = vmatprep.mubr.msk.f32.mxu1 %vm3872_vm3, %v3868_v0 }
0x218f   :  { %3555 = vmatprep.subr.bf16.mxu1 %v3871_v41 }
0x2192   :  { %3557 = vmatpush3.bf16.msra.mxu1 %v4337_v51 }
0x2260   :  { %v2828_v39 = vpop.f32.mrb[16].mxu1 }
0x2261   :  { %v3575_v58 = vadd.f32 %v2828_v39, %v4363_v55  ;;  %v3257_v14 = vpop.f32.mrb[17].mxu1 }
0x2263   :  { %3766 = vtanh.f32 %v3575_v58  ;;  %v3142_v22 = vmul.f32 -1.442695, %v3575_v58  ;;  %v3146_v58 = vld [vmem:[%s4545_s8] ss:$0 sm:$0xff] }
0x2265   :  { %3768 = vpow2.f32 %v3142_v22 }
0x226d   :  { %v3767_v17 = vpop.eup %3766 }
0x226e   :  { %2842 = vrot.lane.b32.xlu0 %v3767_v17, %s3869_s2 }
0x226f   :  { %v3769_v40 = vpop.eup %3768 }
0x2270   :  { %v2836_v48 = vadd.f32 1.0, %v3769_v40 }
0x2272   :  { %3770 = vrcp.f32 %v2836_v48 }
0x227c   :  { %v3771_v43 = vpop.eup %3770 }
0x227d   :  { %v2840_v44 = vmul.f32 %v3771_v43, %v2750_v11  ;;  %v3568_v11 = vpack.c.bf16 %v2997_v26, %v2996_v31 }
0x227f   :  { %3569 = vmatpush3.bf16.msra.mxu0 %v3568_v11 }
0x22e0   :  { %v2843_v42 = vpop.permute.xlu0 %2842 }
0x22e1   :  { %v2845_v0 = vmul.f32 %v3771_v43, %v2843_v42 }
0x22e3   :  { %2847 = vrot.lane.b32.xlu1 %v2845_v0, %s3870_s4 }
0x2355   :  { %v2848_v51 = vpop.permute.xlu1 %2847 }
0x2356   :  { %v2850_v45 = vadd.f32 %v2848_v51, %v2840_v44 }
0x2358   :  { %3772 = vtanh.f32 %v2850_v45 }
0x2359   :  { %3774 = vtanh.f32 %v2255_v59 }
0x235a   :  { %3776 = vpow2.f32 %v3145_v16 }
0x2362   :  { %v3773_v46 = vpop.eup %3772 }
0x2363   :  { %2853 = vrot.lane.b32.xlu0 %v3773_v46, %s3869_s2  ;;  %v3775_v15 = vpop.eup %3774 }
0x2364   :  { %v3777_v21 = vpop.eup %3776 }
0x2365   :  { %v2960_v23 = vadd.f32 1.0, %v3777_v21 }
0x2367   :  { %3778 = vrcp.f32 %v2960_v23 }
0x2371   :  { %v3779_v34 = vpop.eup %3778 }
0x2372   :  { %v2964_v53 = vmul.f32 0.0, %v3779_v34 }
0x23d5   :  { %v2854_v60 = vpop.permute.xlu0 %2853 }
0x23d6   :  { %v2856_v61 = vmul.f32 %v3771_v43, %v2854_v60 }
0x23d8   :  { %2858 = vrot.lane.b32.xlu1 %v2856_v61, %s3870_s4 }
0x23dc   :  { %2966 = vrot.lane.b32.xlu1 %v3775_v15, %s3869_s2 }
0x244a   :  { %v2859_v29 = vpop.permute.xlu1 %2858 }
0x244b   :  { %3267 = vmatmul.mubr.msk.f32.vlgmr.msra.gmra.mrb[18].mxu1 %vm316_vm1, %v2859_v29 }
0x244e   :  { %v2967_v35 = vpop.permute.xlu1 %2966 }
0x244f   :  { %v2969_v54 = vmul.f32 %v3779_v34, %v2967_v35 }
0x2451   :  { %2971 = vrot.lane.b32.xlu1 %v2969_v54, %s3870_s4 }
0x24c3   :  { %v2972_v32 = vpop.permute.xlu1 %2971 }
0x24c4   :  { %v2974_v38 = vadd.f32 %v2972_v32, %v2964_v53 }
0x24c6   :  { %3780 = vtanh.f32 %v2974_v38 }
0x24d0   :  { %v3781_v62 = vpop.eup %3780 }
0x24d1   :  { %2977 = vrot.lane.b32.xlu1 %v3781_v62, %s3869_s2 }
0x251e   :  { %v2928_v4 = vpop.f32.mrb[18].mxu1 }
0x251f   :  { %v2932_v6 = vadd.f32 %v2928_v4, %v2254_v63  ;;  %v3268_v7 = vpop.f32.mrb[19].mxu1 }
0x2521   :  { %3782 = vtanh.f32 %v2932_v6  ;;  %v3144_v12 = vmul.f32 -1.442695, %v2932_v6 }
0x2523   :  { %3784 = vpow2.f32 %v3144_v12 }
0x252b   :  { %v3783_v8 = vpop.eup %3782 }
0x252c   :  { %2942 = vrot.lane.b32.xlu0 %v3783_v8, %s3869_s2 }
0x252d   :  { %v3785_v10 = vpop.eup %3784 }
0x252e   :  { %v2936_v19 = vadd.f32 1.0, %v3785_v10 }
0x2530   :  { %3786 = vrcp.f32 %v2936_v19 }
0x253a   :  { %v3787_v20 = vpop.eup %3786 }
0x253b   :  { %v2940_v49 = vmul.f32 %v3787_v20, %v2850_v45 }
0x2543   :  { %v2978_v5 = vpop.permute.xlu1 %2977 }
0x2544   :  { %v2980_v52 = vmul.f32 %v3779_v34, %v2978_v5 }
0x2546   :  { %2986 = vrot.lane.b32.xlu1 %v2980_v52, %s3869_s2 }
0x259e   :  { %v2943_v24 = vpop.permute.xlu0 %2942 }
0x259f   :  { %v2945_v3 = vmul.f32 %v3787_v20, %v2943_v24 }
0x25a1   :  { %2947 = vrot.lane.b32.xlu0 %v2945_v3, %s3870_s4 }
0x25b8   :  { %v2987_v36 = vpop.permute.xlu1 %2986 }
0x2613   :  { %v2948_v55 = vpop.permute.xlu0 %2947 }
0x2614   :  { %v2950_v47 = vadd.f32 %v2948_v55, %v2940_v49 }
0x2616   :  { %3788 = vtanh.f32 %v2950_v47 }
0x2620   :  { %v3789_v56 = vpop.eup %3788 }
0x2621   :  { %2953 = vrot.lane.b32.xlu0 %v3789_v56, %s3869_s2 }
0x2693   :  { %v2954_v27 = vpop.permute.xlu0 %2953 }
0x2694   :  { %v2956_v33 = vmul.f32 %v3787_v20, %v2954_v27 }
0x2696   :  { %2982 = vrot.lane.b32.xlu0 %v2956_v33, %s3870_s4 }
0x2708   :  { %v2983_v37 = vpop.permute.xlu0 %2982 }
0x2709   :  { %v2989_v39 = vsel %vm316_vm1, %v2983_v37, %v2987_v36 }
0x270a   :  { %3286 = vmatmul.mubr.msk.f32.vlgmr.msra.gmra.mrb[14].mxu0 %vm179_vm2, %v2989_v39 }
0x27dd   :  { %v3074_v14 = vpop.f32.mrb[14].mxu0 }
0x27de   :  { %v3075_v41 = vadd.f32 %v3146_v58, %v3074_v14  ;;  %v3287_v17 = vpop.f32.mrb[15].mxu0 }
0x27e0   :  { %3079 = vst.msk [vmem:[#allocation7] sm:$0x3] %vm3078_vm4, %v3075_v41 }
0x27e1   :  { %3845 = shalt.err (!%p3842_p6)
}
0x27e2   :  { %s3846_s3 = scalar_lea.hbm %s4546_s9, 32 }
0x27e3   :  { %p3847_p7 = scmp.ne.s32.totalorder %s4546_s9, %s3846_s3  ;;  %p3850_p8 = scmp.lt.u32.totalorder %s3846_s3, %s4546_s9 }
0x27e5   :  { %p3852_p9 = pnand %p3850_p8, %p3847_p7 }
0x27e7   :  { %3855 = shalt.err (!%p3852_p9)
}
0x27e8   :  { %3089 = dma.vmem_to_hbm [thread:$0]  %s3087_s0, 32, %s4546_s9, [#allocation4]  }
0x27e9   :  { %3860 = dma.done.wait [#allocation4], 32  }
0x27ea   :  { %3861 = vsyncadd [#allocation4], 4294967264 }
0x27eb   :  { %3093 = vsyncpa [#allocation3], 1 }
0x27ec   :  { %3094 = vsyncpa [#allocation6], 1 }
0x27ed   :  { %3095 = vsyncpa [#allocation4], 1 }

</bundles_post_ra>
